<compile_context>
chip_gen: v7x
topology: tpu7x:2x2x1
jax: 0.10.0
libtpu: 0.0.40
codegen_flags: <defaults>
</compile_context>

<pallas_src>
import functools

import jax
import jax.numpy as jnp
import numpy as np
from jax import lax
from jax.experimental import pallas as pl
from jax.experimental.pallas import tpu as pltpu

GN_GROUPS = 8
GN_EPS = 1e-5  # PyTorch GroupNorm default


def _transp_conv_gn_kernel(x_ref, w_ref, pp_ref, prm_ref, o_ref, *, hw_true):
    """Fused ConvTranspose2d(k=2, s=2) + bias + GroupNorm(8) for a block of samples.

    x_ref:   (Nb, Cin, HWp)  inputs, NCHW flattened over (H, W), lane-padded
    w_ref:   (R, Cin)        conv rows, R = 4*Cout, row order (co, dy, dx)
    pp_ref:  (R, R)          same-GroupNorm-group indicator matrix (0/1, f32)
    prm_ref: (R, 4)          per-row constants [bias, HW*bias, gamma, beta]
    o_ref:   (Nb, R, HWp)    outputs (pre-interleave layout)
    """
    nb, r_rows, _ = o_ref.shape
    inv_count = 1.0 / float((r_rows // GN_GROUPS) * hw_true)   # elems per GN group

    # --- transposed conv: one MXU matmul per sample, N dim = HWp (lane dense) ---
    w_b = jnp.broadcast_to(w_ref[...], (nb,) + w_ref.shape)           # tiny
    y = lax.dot_general(w_b, x_ref[...],
                        dimension_numbers=(((2,), (1,)), ((0,), (0,))),
                        preferred_element_type=jnp.float32)           # (Nb, R, HWp)

    # --- per-row constants (kept on sublanes, matching y's layout) ---
    b_row = prm_ref[:, 0:1][None]                                     # (1, R, 1)
    hwb = prm_ref[:, 1:2][None]                                       # HW * bias
    gamma = prm_ref[:, 2:3][None]
    beta = prm_ref[:, 3:4][None]

    # --- single-pass GroupNorm statistics with the bias folded analytically ---
    # z = y + b (never materialized); padded lanes have y == 0 and are excluded
    # exactly because the bias contribution uses hw_true, not HWp.
    s = jnp.sum(y, axis=2, keepdims=True)                             # (Nb, R, 1)
    q = jnp.sum(y * y, axis=2, keepdims=True)                         # (Nb, R, 1)
    s_z = s + hwb                                                     # sum of z
    q_z = q + b_row * (2.0 * s + hwb)                                 # sum of z^2

    # one group-projection matmul with RHS (R, 2): [sum_z, sumsq_z]
    pp_b = jnp.broadcast_to(pp_ref[...], (nb,) + pp_ref.shape)
    stats = jnp.concatenate([s_z, q_z], axis=2)                       # (Nb, R, 2)
    proj = lax.dot_general(pp_b, stats,
                           dimension_numbers=(((2,), (1,)), ((0,), (0,))),
                           preferred_element_type=jnp.float32) * inv_count
    mean = proj[:, :, 0:1]                                            # per-group mean(z)
    var = proj[:, :, 1:2] - mean * mean                               # E[z^2]-mean^2
    scale = gamma * lax.rsqrt(var + GN_EPS)                           # (Nb, R, 1)
    shift = beta + (b_row - mean) * scale                             # (Nb, R, 1)

    # --- single FMA writeback (bias + normalize + affine fused) ---
    o_ref[...] = y * scale + shift


def _samples_per_step(n, hw_pad):
    """Batch samples per grid step to amortize per-step overhead on small images,
    while keeping >=2 grid steps when the batch allows (v7x megacore)."""
    nb = 1
    while nb < n and n % (2 * nb) == 0 and nb * hw_pad < 512:
        nb *= 2
    return nb


@jax.jit
def transp_conv_block_forward(x_nchw, params):
    """TranspConvBlock forward (normalization='gn'). Input/output NCHW."""
    N, Cin, H, W = x_nchw.shape
    w = params["w"]                         # (Cin, Cout, 2, 2), PyTorch layout
    Cout = w.shape[1]
    assert Cout % GN_GROUPS == 0
    HW = H * W
    HWp = ((HW + 127) // 128) * 128         # lane-dense stores for any resolution
    R = 4 * Cout
    rows_per_group = R // GN_GROUPS

    # Operand prep (layout-only / tiny; traced once under jit).
    x_flat = x_nchw.reshape(N, Cin, HW)                               # no transpose
    if HWp != HW:
        x_flat = jnp.pad(x_flat, ((0, 0), (0, 0), (0, HWp - HW)))
    w_rows = jnp.transpose(w, (1, 2, 3, 0)).reshape(R, Cin)           # rows (co,dy,dx)
    b_rows = jnp.repeat(params["b"], 4)
    g_rows = jnp.repeat(params["gn_w"], 4)
    be_rows = jnp.repeat(params["gn_b"], 4)
    prm = jnp.stack([b_rows, float(HW) * b_rows, g_rows, be_rows], axis=1)  # (R, 4)
    gid = jnp.arange(R) // rows_per_group
    pmat = (gid[:, None] == gid[None, :]).astype(jnp.float32)         # (R, R)

    Nb = _samples_per_step(N, HWp)
    grid = (N // Nb,)
    kernel = functools.partial(_transp_conv_gn_kernel, hw_true=HW)

    out_flat = pl.pallas_call(
        kernel,
        out_shape=jax.ShapeDtypeStruct((N, R, HWp), jnp.float32),
        grid=grid,
        in_specs=[
            pl.BlockSpec((Nb, Cin, HWp), lambda g: (g, 0, 0)),
            pl.BlockSpec((R, Cin), lambda g: (0, 0)),
            pl.BlockSpec((R, R), lambda g: (0, 0)),
            pl.BlockSpec((R, 4), lambda g: (0, 0)),
        ],
        out_specs=pl.BlockSpec((Nb, R, HWp), lambda g: (g, 0, 0)),
        compiler_params=pltpu.CompilerParams(
            dimension_semantics=("parallel",)),
    )(x_flat, w_rows, pmat, prm)

    # (N, R=(co,dy,dx), HWp) -> NCHW (N, Cout, 2H, 2W): one fused XLA transpose.
    out = out_flat[..., :HW].reshape(N, Cout, 2, 2, H, W)
    out = jnp.transpose(out, (0, 1, 4, 2, 5, 3)).reshape(N, Cout, 2 * H, 2 * W)
    return out


# ---------------- pure-JAX reference (for correctness check) ----------------
def _ref_forward(x_nchw, params):
    w, b = params["w"], params["b"]
    gamma, beta = params["gn_w"], params["gn_b"]
    N, Cin, H, W = x_nchw.shape
    Cout = w.shape[1]
    # ConvTranspose2d(k=2, s=2): out[n, k, 2i+d, 2j+e] = sum_c x[n,c,i,j]*w[c,k,d,e]
    y = jnp.einsum("ncij,ckde->nkidje", x_nchw, w)
    y = y.reshape(N, Cout, 2 * H, 2 * W) + b[None, :, None, None]
    # GroupNorm(8), per-sample, biased variance, affine.
    cpg = Cout // GN_GROUPS
    yg = y.reshape(N, GN_GROUPS, cpg, 2 * H, 2 * W)
    mu = jnp.mean(yg, axis=(2, 3, 4), keepdims=True)
    var = jnp.mean((yg - mu) ** 2, axis=(2, 3, 4), keepdims=True)
    yn = ((yg - mu) * lax.rsqrt(var + GN_EPS)).reshape(N, Cout, 2 * H, 2 * W)
    return yn * gamma[None, :, None, None] + beta[None, :, None, None]


# ---------------------------- parameter init --------------------------------
def init_params(key, ch_in, ch_out):
    k = jax.random.split(key, 2)
    bound = 1.0 / np.sqrt(ch_out * 2 * 2)   # ConvTranspose2d-style fan_in bound
    return {
        # PyTorch ConvTranspose2d weight layout: (in_channels, out_channels, kH, kW)
        "w": jax.random.uniform(k[0], (ch_in, ch_out, 2, 2), jnp.float32,
                                -bound, bound),
        "b": jax.random.uniform(k[1], (ch_out,), jnp.float32, -bound, bound),
        "gn_w": jnp.ones((ch_out,), jnp.float32),   # PyTorch GroupNorm default init
        "gn_b": jnp.zeros((ch_out,), jnp.float32),
    }


if __name__ == "__main__":
    key = jax.random.PRNGKey(0)
    kx, kp = jax.random.split(key)

    N, CH_IN, CH_OUT, H, W = 2, 4, 16, 16, 16   # CH_OUT divisible by 8 (GroupNorm)
    x = jax.random.normal(kx, (N, CH_IN, H, W), jnp.float32)   # NCHW like PyTorch
    params = init_params(kp, CH_IN, CH_OUT)

    out = jax.block_until_ready(transp_conv_block_forward(x, params))
    ref = jax.block_until_ready(_ref_forward(x, params))

    assert out.shape == (N, CH_OUT, 2 * H, 2 * W)
    np.testing.assert_allclose(np.asarray(out), np.asarray(ref),
                               rtol=1e-4, atol=1e-4)
    print("KERNEL_OK")
</pallas_src>

<mosaic_0001>
module attributes {stable_mosaic.version = 11 : i64} {
  func.func @_transp_conv_gn_kernel(%arg0: i32, %arg1: memref<2x4x256xf32, #tpu.memory_space<vmem>>, %arg2: memref<64x4xf32, #tpu.memory_space<vmem>>, %arg3: memref<64x64xf32, #tpu.memory_space<vmem>>, %arg4: memref<64x4xf32, #tpu.memory_space<vmem>>, %arg5: memref<2x64x256xf32, #tpu.memory_space<vmem>>) attributes {dimension_semantics = [#tpu.dimension_semantics<parallel>], iteration_bounds = array<i64: 1>, scalar_prefetch = 0 : i64, scratch_operands = 0 : i64, tpu.core_type = #tpu.core_type<tc>, window_params = [{transform_indices = @transform_0, window_bounds = array<i64: 2, 4, 256>}, {pipeline_mode = #tpu.pipeline_mode<synchronous>, transform_indices = @transform_1, window_bounds = array<i64: 64, 4>}, {pipeline_mode = #tpu.pipeline_mode<synchronous>, transform_indices = @transform_2, window_bounds = array<i64: 64, 64>}, {pipeline_mode = #tpu.pipeline_mode<synchronous>, transform_indices = @transform_3, window_bounds = array<i64: 64, 4>}, {transform_indices = @transform_4, window_bounds = array<i64: 2, 64, 256>}]} {
    %c0 = arith.constant 0 : index
    %c0_0 = arith.constant 0 : index
    %0 = vector.load %arg2[%c0, %c0_0] : memref<64x4xf32, #tpu.memory_space<vmem>>, vector<64x4xf32>
    %1 = vector.shape_cast %0 : vector<64x4xf32> to vector<1x64x4xf32>
    %2 = vector.broadcast %1 : vector<1x64x4xf32> to vector<2x64x4xf32>
    %c0_1 = arith.constant 0 : index
    %c0_2 = arith.constant 0 : index
    %c0_3 = arith.constant 0 : index
    %3 = vector.load %arg1[%c0_1, %c0_2, %c0_3] : memref<2x4x256xf32, #tpu.memory_space<vmem>>, vector<2x4x256xf32>
    %cst = arith.constant dense<0.000000e+00> : vector<2x64x256xf32>
    %4 = tpu.matmul %2, %3, %cst {dimension_numbers = #tpu.dot_dimension_numbers<[2], [1], [1], [2], [0, 0, 0, 1, 1, 2], [0], [0]>} : vector<2x64x4xf32>, vector<2x4x256xf32>, vector<2x64x256xf32> -> vector<2x64x256xf32>
    %c0_4 = arith.constant 0 : index
    %c0_5 = arith.constant 0 : index
    %5 = vector.load %arg4[%c0_4, %c0_5] : memref<64x4xf32, #tpu.memory_space<vmem>>, vector<64x1xf32>
    %6 = vector.shape_cast %5 : vector<64x1xf32> to vector<1x64x1xf32>
    %c0_6 = arith.constant 0 : index
    %c1 = arith.constant 1 : index
    %7 = vector.load %arg4[%c0_6, %c1] : memref<64x4xf32, #tpu.memory_space<vmem>>, vector<64x1xf32>
    %8 = vector.shape_cast %7 : vector<64x1xf32> to vector<1x64x1xf32>
    %c0_7 = arith.constant 0 : index
    %c2 = arith.constant 2 : index
    %9 = vector.load %arg4[%c0_7, %c2] : memref<64x4xf32, #tpu.memory_space<vmem>>, vector<64x1xf32>
    %10 = vector.shape_cast %9 : vector<64x1xf32> to vector<1x64x1xf32>
    %c0_8 = arith.constant 0 : index
    %c3 = arith.constant 3 : index
    %11 = vector.load %arg4[%c0_8, %c3] : memref<64x4xf32, #tpu.memory_space<vmem>>, vector<64x1xf32>
    %12 = vector.shape_cast %11 : vector<64x1xf32> to vector<1x64x1xf32>
    %cst_9 = arith.constant dense<0.000000e+00> : vector<2x64xf32>
    %13 = vector.multi_reduction <add>, %4, %cst_9 [2] : vector<2x64x256xf32> to vector<2x64xf32>
    %14 = vector.shape_cast %13 : vector<2x64xf32> to vector<2x64x1xf32>
    %15 = arith.mulf %4, %4 : vector<2x64x256xf32>
    %cst_10 = arith.constant dense<0.000000e+00> : vector<2x64xf32>
    %16 = vector.multi_reduction <add>, %15, %cst_10 [2] : vector<2x64x256xf32> to vector<2x64xf32>
    %17 = vector.shape_cast %16 : vector<2x64xf32> to vector<2x64x1xf32>
    %18 = vector.broadcast %8 : vector<1x64x1xf32> to vector<2x64x1xf32>
    %19 = arith.addf %14, %18 : vector<2x64x1xf32>
    %cst_11 = arith.constant 2.000000e+00 : f32
    %20 = vector.broadcast %cst_11 : f32 to vector<2x64x1xf32>
    %21 = arith.mulf %20, %14 : vector<2x64x1xf32>
    %22 = vector.broadcast %8 : vector<1x64x1xf32> to vector<2x64x1xf32>
    %23 = arith.addf %21, %22 : vector<2x64x1xf32>
    %24 = vector.broadcast %6 : vector<1x64x1xf32> to vector<2x64x1xf32>
    %25 = arith.mulf %24, %23 : vector<2x64x1xf32>
    %26 = arith.addf %17, %25 : vector<2x64x1xf32>
    %c0_12 = arith.constant 0 : index
    %c0_13 = arith.constant 0 : index
    %27 = vector.load %arg3[%c0_12, %c0_13] : memref<64x64xf32, #tpu.memory_space<vmem>>, vector<64x64xf32>
    %28 = vector.shape_cast %27 : vector<64x64xf32> to vector<1x64x64xf32>
    %29 = vector.broadcast %28 : vector<1x64x64xf32> to vector<2x64x64xf32>
    %30 = tpu.concatenate %19, %26 in 2 : vector<2x64x1xf32>, vector<2x64x1xf32> -> vector<2x64x2xf32>
    %cst_14 = arith.constant dense<0.000000e+00> : vector<2x64x2xf32>
    %31 = tpu.matmul %29, %30, %cst_14 {dimension_numbers = #tpu.dot_dimension_numbers<[2], [1], [1], [2], [0, 0, 0, 1, 1, 2], [0], [0]>} : vector<2x64x64xf32>, vector<2x64x2xf32>, vector<2x64x2xf32> -> vector<2x64x2xf32>
    %cst_15 = arith.constant 4.8828125E-4 : f32
    %32 = vector.broadcast %cst_15 : f32 to vector<2x64x2xf32>
    %33 = arith.mulf %31, %32 : vector<2x64x2xf32>
    %34 = vector.extract_strided_slice %33 {offsets = [0, 0, 0], sizes = [2, 64, 1], strides = [1, 1, 1]} : vector<2x64x2xf32> to vector<2x64x1xf32>
    %35 = vector.extract_strided_slice %33 {offsets = [0, 0, 1], sizes = [2, 64, 1], strides = [1, 1, 1]} : vector<2x64x2xf32> to vector<2x64x1xf32>
    %36 = arith.mulf %34, %34 : vector<2x64x1xf32>
    %37 = arith.subf %35, %36 : vector<2x64x1xf32>
    %cst_16 = arith.constant 9.99999974E-6 : f32
    %38 = vector.broadcast %cst_16 : f32 to vector<2x64x1xf32>
    %39 = arith.addf %37, %38 : vector<2x64x1xf32>
    %40 = math.rsqrt %39 : vector<2x64x1xf32>
    %41 = vector.broadcast %10 : vector<1x64x1xf32> to vector<2x64x1xf32>
    %42 = arith.mulf %41, %40 : vector<2x64x1xf32>
    %43 = vector.broadcast %6 : vector<1x64x1xf32> to vector<2x64x1xf32>
    %44 = arith.subf %43, %34 : vector<2x64x1xf32>
    %45 = arith.mulf %44, %42 : vector<2x64x1xf32>
    %46 = vector.broadcast %12 : vector<1x64x1xf32> to vector<2x64x1xf32>
    %47 = arith.addf %46, %45 : vector<2x64x1xf32>
    %48 = vector.broadcast %42 : vector<2x64x1xf32> to vector<2x64x256xf32>
    %49 = arith.mulf %4, %48 : vector<2x64x256xf32>
    %50 = vector.broadcast %47 : vector<2x64x1xf32> to vector<2x64x256xf32>
    %51 = arith.addf %49, %50 : vector<2x64x256xf32>
    %c0_17 = arith.constant 0 : index
    %c0_18 = arith.constant 0 : index
    %c0_19 = arith.constant 0 : index
    %52 = vector.load %arg5[%c0_17, %c0_18, %c0_19] : memref<2x64x256xf32, #tpu.memory_space<vmem>>, vector<2x64x256xf32>
    tpu.vector_store %arg5[%c0_17, %c0_18, %c0_19], %51 {strides = array<i32>} : memref<2x64x256xf32, #tpu.memory_space<vmem>>, vector<2x64x256xf32>,
    return
  }
  func.func @transform_0(%arg0: i32) -> (i32, i32, i32) {
    %c0_i32 = arith.constant 0 : i32
    %c0_i32_0 = arith.constant 0 : i32
    %c0_i32_1 = arith.constant 0 : i32
    return %arg0, %c0_i32, %c0_i32_0 : i32, i32, i32
  }
  func.func @transform_1(%arg0: i32) -> (i32, i32) {
    %c0_i32 = arith.constant 0 : i32
    %c0_i32_0 = arith.constant 0 : i32
    %c0_i32_1 = arith.constant 0 : i32
    return %c0_i32, %c0_i32_0 : i32, i32
  }
  func.func @transform_2(%arg0: i32) -> (i32, i32) {
    %c0_i32 = arith.constant 0 : i32
    %c0_i32_0 = arith.constant 0 : i32
    %c0_i32_1 = arith.constant 0 : i32
    return %c0_i32, %c0_i32_0 : i32, i32
  }
  func.func @transform_3(%arg0: i32) -> (i32, i32) {
    %c0_i32 = arith.constant 0 : i32
    %c0_i32_0 = arith.constant 0 : i32
    %c0_i32_1 = arith.constant 0 : i32
    return %c0_i32, %c0_i32_0 : i32, i32
  }
  func.func @transform_4(%arg0: i32) -> (i32, i32, i32) {
    %c0_i32 = arith.constant 0 : i32
    %c0_i32_0 = arith.constant 0 : i32
    %c0_i32_1 = arith.constant 0 : i32
    return %arg0, %c0_i32, %c0_i32_0 : i32, i32, i32
  }
}

</mosaic_0001>

<bundles_post_ra>
// kernel: transp_conv_block_forward.1
= control target key start
LH: loop header
LB: loop body
LE: loop exit
PB: predicated region body
PF: predicated region fallthrough
CT: control target
= control target key end

     0   :  { %vm54_vm0 = vcmask 1043456   ;;  %v1892_v2 = vmov 0.0   ;;  %vm29_vm1 = vcmask 31744   ;;  %s1893_s9 = smov 127   ;;  %s1894_s23 = smov 1   ;;  %vm724_vm2 = vcmask 523264   ;;  %s2826_s0 = inlined_call_operand.vmem [shape: f32[2,4,256], index: 0, kind: input, shape index: {}]   ;;  %s2827_s1 = inlined_call_operand.vmem [shape: f32[64,4], index: 1, kind: input, shape index: {}]   ;;  %s2828_s3 = inlined_call_operand.vmem [shape: f32[64,4], index: 3, kind: input, shape index: {}]   ;;  %s2829_s2 = inlined_call_operand.vmem [shape: f32[64,64], index: 2, kind: input, shape index: {}]   ;;  %s2830_s4 = inlined_call_operand.vmem [shape: f32[2,64,256], index: 4, kind: output, shape index: {}]  }
   0x1   :  { %v25_v0 = vld [vmem:[%s2826_s0] sm:$0xff]  ;;  %v26_v1 = vld [vmem:[%s2826_s0 + $0x8] sm:$0xff]  ;;  %123 = vmatprep.mubr.f32.mxu0 %v1892_v2  ;;  %242 = vmatprep.mubr.f32.mxu1 %v1892_v2  ;;  %v19_v7 = vld [vmem:[%s2827_s1 + $0x10] sm:$0xff]  ;;  %vm707_vm3 = vcmask 7168   ;;  %s1897_s15 = smov 3  }
   0x2   :  { %v28_v3 = vcombine.high %v25_v0, %v25_v0  ;;  %v173_v4 = vcombine.high %v26_v1, %v26_v1  ;;  %v17_v5 = vld [vmem:[%s2827_s1] sm:$0xff]  ;;  %v18_v6 = vld [vmem:[%s2827_s1 + $0x8] sm:$0xff]  ;;  %v20_v8 = vld [vmem:[%s2827_s1 + $0x18] sm:$0xff] }
   0x3   :  { %v21_v9 = vld [vmem:[%s2827_s1 + $0x20] sm:$0xff]  ;;  %v22_v10 = vld [vmem:[%s2827_s1 + $0x28] sm:$0xff]  ;;  %v23_v11 = vld [vmem:[%s2827_s1 + $0x30] sm:$0xff] }
   0x4   :  { %1603 = vmatprep.subr.msk.mxu0 %vm54_vm0, %v28_v3  ;;  %1613 = vmatprep.subr.msk.mxu1 %vm54_vm0, %v173_v4  ;;  %v24_v12 = vld [vmem:[%s2827_s1 + $0x38] sm:$0xff] }
   0x5   :  { %1604 = vmatpush1.msk.msra.mxu0 %vm54_vm0, %v25_v0  ;;  %1614 = vmatpush1.msk.msra.mxu1 %vm54_vm0, %v26_v1 }
   0x6   :  { %1605 = vmatmul.mubr.msk.f32.vlgmr.msra.gmra.mrb[0].mxu0 %vm29_vm1, %v17_v5  ;;  %1615 = vmatmul.mubr.msk.f32.vlgmr.msra.gmra.mrb[0].mxu1 %vm29_vm1, %v17_v5 }
   0x7   :  { %248 = vmatprep.mubr.f32.mxu1 %v1892_v2  ;;  %129 = vmatprep.mubr.f32.mxu0 %v1892_v2 }
   0xa   :  { %1616 = vmatmul.mubr.msk.f32.gmra.mrb[2].mxu1 %vm29_vm1, %v18_v6  ;;  %1606 = vmatmul.mubr.msk.f32.gmra.mrb[2].mxu0 %vm29_vm1, %v18_v6 }
   0xb   :  { %135 = vmatprep.mubr.f32.mxu0 %v1892_v2  ;;  %254 = vmatprep.mubr.f32.mxu1 %v1892_v2 }
   0xe   :  { %1607 = vmatmul.mubr.msk.f32.gmra.mrb[4].mxu0 %vm29_vm1, %v19_v7  ;;  %1617 = vmatmul.mubr.msk.f32.gmra.mrb[4].mxu1 %vm29_vm1, %v19_v7 }
   0xf   :  { %141 = vmatprep.mubr.f32.mxu0 %v1892_v2  ;;  %260 = vmatprep.mubr.f32.mxu1 %v1892_v2 }
  0x12   :  { %1608 = vmatmul.mubr.msk.f32.gmra.mrb[6].mxu0 %vm29_vm1, %v20_v8  ;;  %1618 = vmatmul.mubr.msk.f32.gmra.mrb[6].mxu1 %vm29_vm1, %v20_v8 }
  0x13   :  { %147 = vmatprep.mubr.f32.mxu0 %v1892_v2  ;;  %266 = vmatprep.mubr.f32.mxu1 %v1892_v2 }
  0x16   :  { %1609 = vmatmul.mubr.msk.f32.gmra.mrb[8].mxu0 %vm29_vm1, %v21_v9  ;;  %1619 = vmatmul.mubr.msk.f32.gmra.mrb[8].mxu1 %vm29_vm1, %v21_v9 }
  0x17   :  { %153 = vmatprep.mubr.f32.mxu0 %v1892_v2  ;;  %272 = vmatprep.mubr.f32.mxu1 %v1892_v2 }
  0x1a   :  { %1610 = vmatmul.mubr.msk.f32.gmra.mrb[10].mxu0 %vm29_vm1, %v22_v10  ;;  %1620 = vmatmul.mubr.msk.f32.gmra.mrb[10].mxu1 %vm29_vm1, %v22_v10 }
  0x1b   :  { %159 = vmatprep.mubr.f32.mxu0 %v1892_v2  ;;  %278 = vmatprep.mubr.f32.mxu1 %v1892_v2 }
  0x1e   :  { %1611 = vmatmul.mubr.msk.f32.gmra.mrb[12].mxu0 %vm29_vm1, %v23_v11  ;;  %1621 = vmatmul.mubr.msk.f32.gmra.mrb[12].mxu1 %vm29_vm1, %v23_v11 }
  0x1f   :  { %165 = vmatprep.mubr.f32.mxu0 %v1892_v2  ;;  %284 = vmatprep.mubr.f32.mxu1 %v1892_v2 }
  0x22   :  { %1612 = vmatmul.mubr.msk.f32.gmra.mrb[14].mxu0 %vm29_vm1, %v24_v12  ;;  %1622 = vmatmul.mubr.msk.f32.gmra.mrb[14].mxu1 %vm29_vm1, %v24_v12 }
  0xd9   :  { %v1970_v13 = vpop.f32.mrb[0].mxu0  ;;  %v1972_v14 = vpop.f32.mrb[0].mxu1 }
  0xda   :  { %v1974_v15 = vpop.f32.mrb[1].mxu0  ;;  %v1976_v16 = vpop.f32.mrb[1].mxu1  ;;  %v347_v17 = vmul.f32 %v1970_v13, %v1970_v13  ;;  %v363_v18 = vmul.f32 %v1972_v14, %v1972_v14 }
  0xdb   :  { %v323_v19 = vadd.f32 %v1976_v16, %v1972_v14  ;;  %v299_v20 = vadd.f32 %v1974_v15, %v1970_v13  ;;  %v348_v21 = vmul.f32 %v1974_v15, %v1974_v15  ;;  %v364_v22 = vmul.f32 %v1976_v16, %v1976_v16 }
  0xdd   :  { %324 = vadd.xlane.f32.xlu1 %v323_v19  ;;  %v1990_v23 = vpop.f32.mrb[2].mxu1  ;;  %300 = vadd.xlane.f32.xlu0 %v299_v20  ;;  %v1992_v24 = vpop.f32.mrb[2].mxu0  ;;  %v379_v25 = vadd.f32 %v348_v21, %v347_v17  ;;  %v403_v26 = vadd.f32 %v364_v22, %v363_v18 }
  0xde   :  { %v1994_v27 = vpop.f32.mrb[3].mxu1  ;;  %v1996_v28 = vpop.f32.mrb[3].mxu0  ;;  %v349_v29 = vmul.f32 %v1992_v24, %v1992_v24  ;;  %v365_v30 = vmul.f32 %v1990_v23, %v1990_v23 }
  0xdf   :  { %v326_v31 = vadd.f32 %v1994_v27, %v1990_v23  ;;  %v350_v32 = vmul.f32 %v1996_v28, %v1996_v28  ;;  %v366_v33 = vmul.f32 %v1994_v27, %v1994_v27  ;;  %v302_v34 = vadd.f32 %v1996_v28, %v1992_v24 }
  0xe1   :  { %327 = vadd.xlane.f32.xlu1 %v326_v31  ;;  %380 = vadd.xlane.f32.xlu0 %v379_v25  ;;  %v2010_v35 = vpop.f32.mrb[4].mxu0  ;;  %v382_v36 = vadd.f32 %v350_v32, %v349_v29  ;;  %v2012_v37 = vpop.f32.mrb[4].mxu1  ;;  %v406_v38 = vadd.f32 %v366_v33, %v365_v30 }
  0xe2   :  { %2847 = vst [vmem:[#allocation2_spill] sm:$0xff] %v2010_v35  ;;  %v2014_v39 = vpop.f32.mrb[5].mxu0  ;;  %v2016_v40 = vpop.f32.mrb[5].mxu1  ;;  %v351_v41 = vmul.f32 %v2010_v35, %v2010_v35  ;;  %v367_v42 = vmul.f32 %v2012_v37, %v2012_v37 }
  0xe3   :  { %2848 = vst [vmem:[#allocation3_spill] sm:$0xff] %v2014_v39  ;;  %v305_v43 = vadd.f32 %v2014_v39, %v2010_v35  ;;  %v329_v44 = vadd.f32 %v2016_v40, %v2012_v37  ;;  %v352_v45 = vmul.f32 %v2014_v39, %v2014_v39  ;;  %v368_v46 = vmul.f32 %v2016_v40, %v2016_v40 }
  0xe5   :  { %404 = vadd.xlane.f32.xlu0 %v403_v26  ;;  %383 = vadd.xlane.f32.xlu1 %v382_v36  ;;  %v2030_v47 = vpop.f32.mrb[6].mxu0  ;;  %v2032_v48 = vpop.f32.mrb[6].mxu1  ;;  %v2034_v49 = vadd.f32 %v352_v45, %v351_v41  ;;  %v2036_v50 = vadd.f32 %v368_v46, %v367_v42 }
  0xe6   :  { %v2038_v51 = vpop.f32.mrb[7].mxu0  ;;  %v2040_v52 = vpop.f32.mrb[7].mxu1  ;;  %v353_v53 = vmul.f32 %v2030_v47, %v2030_v47  ;;  %v369_v54 = vmul.f32 %v2032_v48, %v2032_v48 }
  0xe7   :  { %v308_v55 = vadd.f32 %v2038_v51, %v2030_v47  ;;  %v332_v56 = vadd.f32 %v2040_v52, %v2032_v48  ;;  %v354_v57 = vmul.f32 %v2038_v51, %v2038_v51  ;;  %v370_v58 = vmul.f32 %v2040_v52, %v2040_v52 }
  0xe9   :  { %407 = vadd.xlane.f32.xlu1 %v406_v38  ;;  %303 = vadd.xlane.f32.xlu0 %v302_v34  ;;  %v2054_v59 = vpop.f32.mrb[8].mxu0  ;;  %v2056_v60 = vpop.f32.mrb[8].mxu1  ;;  %v388_v61 = vadd.f32 %v354_v57, %v353_v53  ;;  %v412_v62 = vadd.f32 %v370_v58, %v369_v54 }
  0xea   :  { %2849 = vst [vmem:[#allocation4_spill] sm:$0xff] %v2056_v60  ;;  %v2058_v63 = vpop.f32.mrb[9].mxu0  ;;  %v2060_v0 = vpop.f32.mrb[9].mxu1  ;;  %v355_v1 = vmul.f32 %v2054_v59, %v2054_v59  ;;  %v371_v2 = vmul.f32 %v2056_v60, %v2056_v60 }
  0xeb   :  { %2850 = vst [vmem:[#allocation5_spill] sm:$0xff] %v2060_v0  ;;  %v311_v3 = vadd.f32 %v2058_v63, %v2054_v59  ;;  %v335_v4 = vadd.f32 %v2060_v0, %v2056_v60  ;;  %v356_v5 = vmul.f32 %v2058_v63, %v2058_v63  ;;  %v372_v6 = vmul.f32 %v2060_v0, %v2060_v0 }
  0xed   :  { %306 = vadd.xlane.f32.xlu0 %v305_v43  ;;  %309 = vadd.xlane.f32.xlu1 %v308_v55  ;;  %v2074_v7 = vpop.f32.mrb[10].mxu0  ;;  %v2076_v8 = vpop.f32.mrb[10].mxu1  ;;  %v391_v9 = vadd.f32 %v356_v5, %v355_v1  ;;  %v415_v10 = vadd.f32 %v372_v6, %v371_v2 }
  0xee   :  { %2851 = vst [vmem:[#allocation6_spill] sm:$0xff] %v2074_v7  ;;  %2852 = vst [vmem:[#allocation7_spill] sm:$0xff] %v2076_v8  ;;  %v2078_v11 = vpop.f32.mrb[11].mxu0  ;;  %v2080_v12 = vpop.f32.mrb[11].mxu1  ;;  %v357_v17 = vmul.f32 %v2074_v7, %v2074_v7  ;;  %v373_v18 = vmul.f32 %v2076_v8, %v2076_v8 }
  0xef   :  { %2853 = vst [vmem:[#allocation8_spill] sm:$0xff] %v2078_v11  ;;  %2854 = vst [vmem:[#allocation9_spill] sm:$0xff] %v2080_v12  ;;  %v314_v19 = vadd.f32 %v2078_v11, %v2074_v7  ;;  %v338_v20 = vadd.f32 %v2080_v12, %v2076_v8  ;;  %v358_v21 = vmul.f32 %v2078_v11, %v2078_v11 }
  0xf0   :  { %v374_v22 = vmul.f32 %v2080_v12, %v2080_v12 }
  0xf1   :  { %330 = vadd.xlane.f32.xlu0 %v329_v44  ;;  %333 = vadd.xlane.f32.xlu1 %v332_v56  ;;  %v2094_v25 = vpop.f32.mrb[12].mxu0  ;;  %v2096_v26 = vpop.f32.mrb[12].mxu1  ;;  %v394_v29 = vadd.f32 %v358_v21, %v357_v17 }
  0xf2   :  { %2855 = vst [vmem:[#allocation10_spill] sm:$0xff] %v2094_v25  ;;  %2856 = vst [vmem:[#allocation11_spill] sm:$0xff] %v2096_v26  ;;  %v418_v30 = vadd.f32 %v374_v22, %v373_v18  ;;  %v2098_v31 = vpop.f32.mrb[13].mxu0  ;;  %v2100_v32 = vpop.f32.mrb[13].mxu1  ;;  %v359_v33 = vmul.f32 %v2094_v25, %v2094_v25  ;;  %v375_v34 = vmul.f32 %v2096_v26, %v2096_v26 }
  0xf3   :  { %2857 = vst [vmem:[#allocation12_spill] sm:$0xff] %v2098_v31  ;;  %2858 = vst [vmem:[#allocation13_spill] sm:$0xff] %v2100_v32  ;;  %v317_v36 = vadd.f32 %v2098_v31, %v2094_v25  ;;  %v341_v38 = vadd.f32 %v2100_v32, %v2096_v26  ;;  %v360_v41 = vmul.f32 %v2098_v31, %v2098_v31 }
  0xf4   :  { %v376_v42 = vmul.f32 %v2100_v32, %v2100_v32 }
  0xf5   :  { %312 = vadd.xlane.f32.xlu0 %v311_v3  ;;  %315 = vadd.xlane.f32.xlu1 %v314_v19  ;;  %v2114_v43 = vpop.f32.mrb[14].mxu0  ;;  %v2116_v44 = vpop.f32.mrb[14].mxu1  ;;  %v397_v45 = vadd.f32 %v360_v41, %v359_v33  ;;  %v2172_v41 = vld [vmem:[%s2828_s3 + $0x10] sm:$0xff] }
  0xf6   :  { %2859 = vst [vmem:[#allocation14_spill] sm:$0xff] %v2114_v43  ;;  %2860 = vst [vmem:[#allocation15_spill] sm:$0xff] %v2116_v44  ;;  %v421_v46 = vadd.f32 %v376_v42, %v375_v34  ;;  %v2118_v53 = vpop.f32.mrb[15].mxu0  ;;  %v2120_v54 = vpop.f32.mrb[15].mxu1  ;;  %v361_v55 = vmul.f32 %v2114_v43, %v2114_v43  ;;  %v377_v56 = vmul.f32 %v2116_v44, %v2116_v44 }
  0xf7   :  { %2861 = vst [vmem:[#allocation16_spill] sm:$0xff] %v2118_v53  ;;  %2862 = vst [vmem:[#allocation17_spill] sm:$0xff] %v2120_v54  ;;  %v320_v57 = vadd.f32 %v2118_v53, %v2114_v43  ;;  %v344_v58 = vadd.f32 %v2120_v54, %v2116_v44  ;;  %v362_v1 = vmul.f32 %v2118_v53, %v2118_v53 }
  0xf8   :  { %v378_v2 = vmul.f32 %v2120_v54, %v2120_v54 }
  0xf9   :  { %336 = vadd.xlane.f32.xlu0 %v335_v4  ;;  %339 = vadd.xlane.f32.xlu1 %v338_v20  ;;  %v400_v3 = vadd.f32 %v362_v1, %v361_v55 }
  0xfa   :  { %v424_v5 = vadd.f32 %v378_v2, %v377_v56 }
  0xfd   :  { %389 = vadd.xlane.f32.xlu1 %v388_v61  ;;  %318 = vadd.xlane.f32.xlu0 %v317_v36 }
 0x101   :  { %413 = vadd.xlane.f32.xlu1 %v412_v62  ;;  %342 = vadd.xlane.f32.xlu0 %v341_v38 }
 0x105   :  { %395 = vadd.xlane.f32.xlu1 %v394_v29  ;;  %386 = vadd.xlane.f32.xlu0 %v2034_v49  ;;  %v2145_v49 = vld [vmem:[%s2828_s3] sm:$0xff]  ;;  %v2164_v29 = vld [vmem:[%s2828_s3 + $0x8] sm:$0xff] }
 0x109   :  { %419 = vadd.xlane.f32.xlu1 %v418_v30  ;;  %410 = vadd.xlane.f32.xlu0 %v2036_v50 }
 0x10d   :  { %392 = vadd.xlane.f32.xlu0 %v391_v9  ;;  %321 = vadd.xlane.f32.xlu1 %v320_v57 }
 0x111   :  { %416 = vadd.xlane.f32.xlu0 %v415_v10  ;;  %345 = vadd.xlane.f32.xlu1 %v344_v58  ;;  %v2186_v58 = vld [vmem:[%s2828_s3 + $0x18] sm:$0xff] }
 0x115   :  { %398 = vadd.xlane.f32.xlu0 %v397_v45  ;;  %401 = vadd.xlane.f32.xlu1 %v400_v3 }
 0x119   :  { %422 = vadd.xlane.f32.xlu0 %v421_v46  ;;  %425 = vadd.xlane.f32.xlu1 %v424_v5 }
 0x16a   :  { %v2136_v4 = vpop.xlane.xlu1 %324  ;;  %v2138_v61 = vpop.xlane.xlu0 %300 }
 0x16b   :  { %v451_v62 = vmul.f32 2.0, %v2136_v4  ;;  %v443_v6 = vmul.f32 2.0, %v2138_v61 }
 0x16d   :  { %v459_v50 = vadd.f32 %v443_v6, %v2145_v49  ;;  %v467_v9 = vadd.f32 %v451_v62, %v2145_v49 }
 0x16e   :  { %v2149_v10 = vpop.xlane.xlu1 %327  ;;  %v2151_v17 = vpop.xlane.xlu0 %380 }
 0x16f   :  { %491 = vrot.lane.b32.xlu0 %v459_v50, %s1893_s9  ;;  %507 = vrot.lane.b32.xlu1 %v467_v9, %s1893_s9  ;;  %v452_v30 = vmul.f32 2.0, %v2149_v10  ;;  %v2196_v50 = vld [vmem:[%s2828_s3 + $0x20] sm:$0xff] }
 0x171   :  { %v468_v46 = vadd.f32 %v452_v30, %v2164_v29 }
 0x172   :  { %v2155_v18 = vpop.xlane.xlu0 %404  ;;  %v2157_v19 = vpop.xlane.xlu1 %383 }
 0x176   :  { %v2159_v20 = vpop.xlane.xlu1 %407  ;;  %v304_v21 = vpop.xlane.xlu0 %303 }
 0x177   :  { %v444_v22 = vmul.f32 2.0, %v304_v21  ;;  %v428_v53 = vadd.f32 %v304_v21, %v2164_v29 }
 0x179   :  { %v460_v33 = vadd.f32 %v444_v22, %v2164_v29 }
 0x17a   :  { %v307_v34 = vpop.xlane.xlu0 %306  ;;  %v310_v36 = vpop.xlane.xlu1 %309 }
 0x17b   :  { %v445_v38 = vmul.f32 2.0, %v307_v34  ;;  %493 = vrot.lane.b32.xlu1 %v460_v33, %s1893_s9  ;;  %v446_v42 = vmul.f32 2.0, %v310_v36 }
 0x17d   :  { %v461_v45 = vadd.f32 %v445_v38, %v2172_v41  ;;  %v462_v3 = vadd.f32 %v446_v42, %v2186_v58 }
 0x17e   :  { %v2176_v55 = vpop.xlane.xlu0 %330  ;;  %v2178_v56 = vpop.xlane.xlu1 %333 }
 0x17f   :  { %v453_v57 = vmul.f32 2.0, %v2176_v55  ;;  %495 = vrot.lane.b32.xlu0 %v461_v45, %s1893_s9  ;;  %509 = vrot.lane.b32.xlu1 %v468_v46, %s1893_s9  ;;  %v454_v1 = vmul.f32 2.0, %v2178_v56  ;;  %v2205_v45 = vld [vmem:[%s2828_s3 + $0x28] sm:$0xff] }
 0x181   :  { %v469_v2 = vadd.f32 %v453_v57, %v2172_v41  ;;  %v470_v30 = vadd.f32 %v454_v1, %v2186_v58  ;;  %v2214_v1 = vld [vmem:[%s2828_s3 + $0x30] sm:$0xff] }
 0x182   :  { %v313_v5 = vpop.xlane.xlu0 %312  ;;  %v316_v62 = vpop.xlane.xlu1 %315 }
 0x183   :  { %v447_v6 = vmul.f32 2.0, %v313_v5  ;;  %511 = vrot.lane.b32.xlu0 %v469_v2, %s1893_s9  ;;  %497 = vrot.lane.b32.xlu1 %v462_v3, %s1893_s9  ;;  %v448_v9 = vmul.f32 2.0, %v316_v62 }
 0x185   :  { %v463_v22 = vadd.f32 %v447_v6, %v2196_v50  ;;  %v464_v2 = vadd.f32 %v448_v9, %v2205_v45 }
 0x186   :  { %v337_v33 = vpop.xlane.xlu0 %336  ;;  %v340_v38 = vpop.xlane.xlu1 %339 }
 0x187   :  { %v455_v42 = vmul.f32 2.0, %v337_v33  ;;  %499 = vrot.lane.b32.xlu0 %v463_v22, %s1893_s9  ;;  %513 = vrot.lane.b32.xlu1 %v470_v30, %s1893_s9  ;;  %v456_v46 = vmul.f32 2.0, %v340_v38 }
 0x189   :  { %v471_v57 = vadd.f32 %v455_v42, %v2196_v50  ;;  %v472_v54 = vadd.f32 %v456_v46, %v2205_v45  ;;  %v429_v46 = vadd.f32 %v307_v34, %v2172_v41 }
 0x18a   :  { %v2209_v3 = vpop.xlane.xlu1 %389  ;;  %v319_v6 = vpop.xlane.xlu0 %318 }
 0x18b   :  { %v449_v22 = vmul.f32 2.0, %v319_v6  ;;  %515 = vrot.lane.b32.xlu0 %v471_v57, %s1893_s9  ;;  %501 = vrot.lane.b32.xlu1 %v464_v2, %s1893_s9  ;;  %v427_v57 = vadd.f32 %v2138_v61, %v2145_v49  ;;  %v430_v2 = vadd.f32 %v310_v36, %v2186_v58  ;;  %v2241_v61 = vld [vmem:[%s2828_s3 + $0x38] sm:$0xff] }
 0x18d   :  { %v465_v30 = vadd.f32 %v449_v22, %v2214_v1  ;;  %v1766_v22 = vpack.i.bf16 %v428_v53, %v427_v57  ;;  %v1776_v21 = vpack.i.bf16 %v430_v2, %v429_v46 }
 0x18e   :  { %v2220_v42 = vpop.xlane.xlu1 %413  ;;  %v343_v9 = vpop.xlane.xlu0 %342 }
 0x18f   :  { %v457_v44 = vmul.f32 2.0, %v343_v9  ;;  %503 = vrot.lane.b32.xlu0 %v465_v30, %s1893_s9  ;;  %517 = vrot.lane.b32.xlu1 %v472_v54, %s1893_s9  ;;  %v431_v54 = vadd.f32 %v313_v5, %v2196_v50  ;;  %v433_v5 = vadd.f32 %v319_v6, %v2214_v1  ;;  %v437_v6 = vadd.f32 %v2176_v55, %v2172_v41 }
 0x191   :  { %v473_v43 = vadd.f32 %v457_v44, %v2214_v1  ;;  %v432_v44 = vadd.f32 %v316_v62, %v2205_v45  ;;  %v436_v62 = vadd.f32 %v2149_v10, %v2164_v29  ;;  %v439_v10 = vadd.f32 %v337_v33, %v2196_v50 }
 0x192   :  { %v2226_v32 = vpop.xlane.xlu1 %395 }
 0x193   :  { %519 = vrot.lane.b32.xlu0 %v473_v43, %s1893_s9  ;;  %v1786_v34 = vpack.i.bf16 %v432_v44, %v431_v54  ;;  %v438_v54 = vadd.f32 %v2178_v56, %v2186_v58  ;;  %v387_v56 = vpop.xlane.xlu0 %386 }
 0x196   :  { %v2233_v26 = vpop.xlane.xlu1 %419 }
 0x197   :  { %1767 = vrot.lane.b32.xlu0 %v1766_v22, %s1893_s9 }
 0x19a   :  { %v322_v43 = vpop.xlane.xlu1 %321 }
 0x19b   :  { %v450_v30 = vmul.f32 2.0, %v322_v43  ;;  %1777 = vrot.lane.b32.xlu0 %v1776_v21, %s1893_s9  ;;  %v434_v53 = vadd.f32 %v322_v43, %v2241_v61  ;;  %v435_v21 = vadd.f32 %v2136_v4, %v2145_v49  ;;  %v440_v43 = vadd.f32 %v340_v38, %v2205_v45 }
 0x19d   :  { %v466_v36 = vadd.f32 %v450_v30, %v2241_v61  ;;  %v1796_v46 = vpack.i.bf16 %v434_v53, %v433_v5  ;;  %v1771_v44 = vpack.i.bf16 %v436_v62, %v435_v21  ;;  %v1781_v30 = vpack.i.bf16 %v438_v54, %v437_v6 }
 0x19e   :  { %v346_v57 = vpop.xlane.xlu1 %345  ;;  %v1791_v53 = vpack.i.bf16 %v440_v43, %v439_v10 }
 0x19f   :  { %v458_v22 = vmul.f32 2.0, %v346_v57  ;;  %1787 = vrot.lane.b32.xlu0 %v1786_v34, %s1893_s9  ;;  %505 = vrot.lane.b32.xlu1 %v466_v36, %s1893_s9  ;;  %v442_v4 = vadd.f32 %v346_v57, %v2241_v61  ;;  %v441_v34 = vadd.f32 %v343_v9, %v2214_v1  ;;  %v411_v36 = vpop.xlane.xlu0 %410 }
 0x1a1   :  { %v474_v2 = vadd.f32 %v458_v22, %v2241_v61  ;;  %v1801_v55 = vpack.i.bf16 %v442_v4, %v441_v34 }
 0x1a2   :  { %v2270_v38 = vpop.xlane.xlu1 %401 }
 0x1a3   :  { %1797 = vrot.lane.b32.xlu0 %v1796_v46, %s1893_s9  ;;  %521 = vrot.lane.b32.xlu1 %v474_v2, %s1893_s9  ;;  %v393_v5 = vpop.xlane.xlu0 %392 }
 0x1a6   :  { %v2274_v46 = vpop.xlane.xlu1 %425 }
 0x1a7   :  { %1772 = vrot.lane.b32.xlu1 %v1771_v44, %s1893_s9  ;;  %v417_v22 = vpop.xlane.xlu0 %416 }
 0x1ab   :  { %1782 = vrot.lane.b32.xlu1 %v1781_v30, %s1893_s9  ;;  %v2268_v33 = vpop.xlane.xlu0 %398 }
 0x1af   :  { %1792 = vrot.lane.b32.xlu1 %v1791_v53, %s1893_s9  ;;  %v2272_v62 = vpop.xlane.xlu0 %422 }
 0x1b3   :  { %1802 = vrot.lane.b32.xlu1 %v1801_v55, %s1893_s9 }
 0x1e1   :  { %v492_v57 = vpop.permute.xlu0 %491  ;;  %v508_v2 = vpop.permute.xlu1 %507 }
 0x1e2   :  { %v539_v9 = vmul.f32 %v492_v57, %v2145_v49  ;;  %v547_v44 = vmul.f32 %v508_v2, %v2145_v49 }
 0x1e4   :  { %v555_v54 = vadd.f32 %v539_v9, %v2151_v17  ;;  %v563_v34 = vadd.f32 %v547_v44, %v2155_v18 }
 0x1ed   :  { %v494_v21 = vpop.permute.xlu1 %493 }
 0x1ee   :  { %v540_v6 = vmul.f32 %v494_v21, %v2164_v29 }
 0x1f0   :  { %v556_v10 = vadd.f32 %v540_v6, %v2157_v19 }
 0x1f1   :  { %v496_v43 = vpop.permute.xlu0 %495  ;;  %v510_v30 = vpop.permute.xlu1 %509 }
 0x1f2   :  { %v548_v4 = vmul.f32 %v510_v30, %v2164_v29  ;;  %v1806_v53 = vpack.i.bf16 %v556_v10, %v555_v54  ;;  %v541_v55 = vmul.f32 %v496_v43, %v2172_v41 }
 0x1f4   :  { %v564_v57 = vadd.f32 %v548_v4, %v2159_v20  ;;  %1807 = vrot.lane.b32.xlu0 %v1806_v53, %s1894_s23  ;;  %v557_v19 = vadd.f32 %v541_v55, %v387_v56 }
 0x1f5   :  { %v512_v21 = vpop.permute.xlu0 %511  ;;  %v498_v17 = vpop.permute.xlu1 %497 }
 0x1f6   :  { %v542_v2 = vmul.f32 %v498_v17, %v2186_v58  ;;  %v1811_v9 = vpack.i.bf16 %v564_v57, %v563_v34  ;;  %v549_v6 = vmul.f32 %v512_v21, %v2172_v41 }
 0x1f8   :  { %v558_v30 = vadd.f32 %v542_v2, %v2209_v3  ;;  %1812 = vrot.lane.b32.xlu1 %v1811_v9, %s1894_s23  ;;  %v565_v10 = vadd.f32 %v549_v6, %v411_v36 }
 0x1f9   :  { %v500_v18 = vpop.permute.xlu0 %499  ;;  %v514_v54 = vpop.permute.xlu1 %513 }
 0x1fa   :  { %v550_v44 = vmul.f32 %v514_v54, %v2186_v58  ;;  %v1816_v20 = vpack.i.bf16 %v558_v30, %v557_v19  ;;  %v543_v43 = vmul.f32 %v500_v18, %v2196_v50  ;;  %v571_v54 = vld [vmem:[%s2829_s2] sm:$0xff] }
 0x1fb   :  { %1687 = vmatprep.mubr.msk.f32.mxu0 %vm724_vm2, %v571_v54  ;;  %1715 = vmatprep.mubr.msk.f32.mxu1 %vm724_vm2, %v571_v54 }
 0x1fc   :  { %v566_v4 = vadd.f32 %v550_v44, %v2220_v42  ;;  %1817 = vrot.lane.b32.xlu0 %v1816_v20, %s1894_s23  ;;  %v559_v3 = vadd.f32 %v543_v43, %v393_v5 }
 0x1fd   :  { %v516_v53 = vpop.permute.xlu0 %515  ;;  %v502_v56 = vpop.permute.xlu1 %501 }
 0x1fe   :  { %v544_v34 = vmul.f32 %v502_v56, %v2205_v45  ;;  %v1821_v55 = vpack.i.bf16 %v566_v4, %v565_v10  ;;  %v551_v57 = vmul.f32 %v516_v53, %v2196_v50 }
 0x200   :  { %v560_v21 = vadd.f32 %v544_v34, %v2226_v32  ;;  %1822 = vrot.lane.b32.xlu1 %v1821_v55, %s1894_s23  ;;  %v567_v9 = vadd.f32 %v551_v57, %v417_v22 }
 0x201   :  { %v518_v17 = vpop.permute.xlu1 %517  ;;  %v504_v6 = vpop.permute.xlu0 %503 }
 0x202   :  { %v552_v36 = vmul.f32 %v518_v17, %v2205_v45  ;;  %v1826_v2 = vpack.i.bf16 %v560_v21, %v559_v3  ;;  %v545_v5 = vmul.f32 %v504_v6, %v2214_v1 }
 0x204   :  { %v568_v42 = vadd.f32 %v552_v36, %v2233_v26  ;;  %1827 = vrot.lane.b32.xlu0 %v1826_v2, %s1894_s23  ;;  %v561_v26 = vadd.f32 %v545_v5, %v2268_v33 }
 0x205   :  { %v520_v30 = vpop.permute.xlu0 %519 }
 0x206   :  { %v1831_v19 = vpack.i.bf16 %v568_v42, %v567_v9  ;;  %v553_v22 = vmul.f32 %v520_v30, %v2214_v1 }
 0x208   :  { %1832 = vrot.lane.b32.xlu1 %v1831_v19, %s1894_s23  ;;  %v569_v4 = vadd.f32 %v553_v22, %v2272_v62 }
 0x209   :  { %v1768_v34 = vpop.permute.xlu0 %1767 }
 0x20a   :  { %v1770_v62 = vunpack.i.h.bf16 %v1768_v34  ;;  %v1769_v2 = vunpack.i.l.bf16 %v1768_v34 }
 0x20d   :  { %v1778_v33 = vpop.permute.xlu0 %1777 }
 0x211   :  { %v506_v18 = vpop.permute.xlu1 %505  ;;  %v1788_v57 = vpop.permute.xlu0 %1787 }
 0x212   :  { %v546_v32 = vmul.f32 %v506_v18, %v2241_v61 }
 0x214   :  { %v562_v44 = vadd.f32 %v546_v32, %v2270_v38 }
 0x215   :  { %v522_v20 = vpop.permute.xlu1 %521  ;;  %v2317_v38 = vpop.permute.xlu0 %1797 }
 0x216   :  { %v554_v10 = vmul.f32 %v522_v20, %v2241_v61  ;;  %v1836_v43 = vpack.i.bf16 %v562_v44, %v561_v26 }
 0x218   :  { %v570_v53 = vadd.f32 %v554_v10, %v2274_v46  ;;  %1837 = vrot.lane.b32.xlu0 %v1836_v43, %s1894_s23  ;;  %v1780_v10 = vunpack.i.h.bf16 %v1778_v33  ;;  %v1779_v43 = vunpack.i.l.bf16 %v1778_v33 }
 0x219   :  { %v1773_v55 = vpop.permute.xlu1 %1772 }
 0x21a   :  { %v1841_v56 = vpack.i.bf16 %v570_v53, %v569_v4  ;;  %v1775_v30 = vunpack.i.h.bf16 %v1773_v55  ;;  %v1774_v18 = vunpack.i.l.bf16 %v1773_v55 }
 0x21c   :  { %1842 = vrot.lane.b32.xlu1 %v1841_v56, %s1894_s23 }
 0x21d   :  { %v1783_v3 = vpop.permute.xlu1 %1782 }
 0x221   :  { %v1793_v21 = vpop.permute.xlu1 %1792 }
 0x225   :  { %v2319_v17 = vpop.permute.xlu1 %1802 }
 0x266   :  { %v1808_v36 = vpop.permute.xlu0 %1807 }
 0x267   :  { %v1810_v46 = vunpack.i.h.bf16 %v1808_v36  ;;  %v1809_v9 = vunpack.i.l.bf16 %v1808_v36 }
 0x269   :  { %v708_v42 = vsel %vm707_vm3, %v1769_v2, %v1809_v9  ;;  %v709_v19 = vsel %vm707_vm3, %v1770_v62, %v1810_v46  ;;  %v1785_v62 = vunpack.i.h.bf16 %v1783_v3  ;;  %v1784_v2 = vunpack.i.l.bf16 %v1783_v3 }
 0x26a   :  { %v1813_v6 = vpop.permute.xlu1 %1812  ;;  %v1727_v5 = vpack.c.bf16 %v709_v19, %v708_v42 }
 0x26b   :  { %v1815_v32 = vunpack.i.h.bf16 %v1813_v6  ;;  %v1814_v54 = vunpack.i.l.bf16 %v1813_v6 }
 0x26c   :  { %1728 = vmatprep.subr.bf16.mxu0 %v1727_v5 }
 0x26d   :  { %1730 = vmatpush3.bf16.msra.mxu0 %v1727_v5  ;;  %v716_v26 = vsel %vm707_vm3, %v1774_v18, %v1814_v54  ;;  %v717_v22 = vsel %vm707_vm3, %v1775_v30, %v1815_v32  ;;  %v1790_v5 = vunpack.i.h.bf16 %v1788_v57  ;;  %v1789_v30 = vunpack.i.l.bf16 %v1788_v57 }
 0x26e   :  { %v1818_v44 = vpop.permute.xlu0 %1817  ;;  %v1743_v20 = vpack.c.bf16 %v717_v22, %v716_v26 }
 0x26f   :  { %v1820_v4 = vunpack.i.h.bf16 %v1818_v44  ;;  %v1819_v53 = vunpack.i.l.bf16 %v1818_v44  ;;  %v1795_v44 = vunpack.i.h.bf16 %v1793_v21 }
 0x270   :  { %1744 = vmatprep.subr.bf16.mxu1 %v1743_v20 }
 0x271   :  { %1746 = vmatpush3.bf16.msra.mxu1 %v1743_v20  ;;  %v710_v56 = vsel %vm707_vm3, %v1779_v43, %v1819_v53  ;;  %v711_v34 = vsel %vm707_vm3, %v1780_v10, %v1820_v4  ;;  %v1794_v20 = vunpack.i.l.bf16 %v1793_v21 }
 0x272   :  { %v1823_v55 = vpop.permute.xlu1 %1822  ;;  %v1731_v36 = vpack.c.bf16 %v711_v34, %v710_v56  ;;  %v1800_v34 = vunpack.i.h.bf16 %v2317_v38 }
 0x273   :  { %v1825_v46 = vunpack.i.h.bf16 %v1823_v55  ;;  %v1824_v9 = vunpack.i.l.bf16 %v1823_v55  ;;  %v1799_v55 = vunpack.i.l.bf16 %v2317_v38  ;;  %v572_v38 = vld [vmem:[%s2829_s2 + $0x8] sm:$0xff] }
 0x274   :  { %1732 = vmatprep.subr.bf16.mxu0 %v1731_v36 }
 0x275   :  { %1734 = vmatpush3.bf16.msra.mxu0 %v1731_v36  ;;  %v718_v42 = vsel %vm707_vm3, %v1784_v2, %v1824_v9  ;;  %v719_v33 = vsel %vm707_vm3, %v1785_v62, %v1825_v46 }
 0x276   :  { %v1828_v19 = vpop.permute.xlu0 %1827  ;;  %v1747_v6 = vpack.c.bf16 %v719_v33, %v718_v42  ;;  %v1805_v42 = vunpack.i.h.bf16 %v2319_v17  ;;  %v1804_v33 = vunpack.i.l.bf16 %v2319_v17  ;;  %v574_v17 = vld [vmem:[%s2829_s2 + $0x18] sm:$0xff] }
 0x277   :  { %v1830_v18 = vunpack.i.h.bf16 %v1828_v19  ;;  %v1829_v32 = vunpack.i.l.bf16 %v1828_v19 }
 0x278   :  { %1748 = vmatprep.subr.bf16.mxu1 %v1747_v6 }
 0x279   :  { %1750 = vmatpush3.bf16.msra.mxu1 %v1747_v6  ;;  %v712_v54 = vsel %vm707_vm3, %v1789_v30, %v1829_v32  ;;  %v713_v3 = vsel %vm707_vm3, %v1790_v5, %v1830_v18  ;;  %v573_v32 = vld [vmem:[%s2829_s2 + $0x10] sm:$0xff] }
 0x27a   :  { %v1833_v26 = vpop.permute.xlu1 %1832  ;;  %v1735_v22 = vpack.c.bf16 %v713_v3, %v712_v54  ;;  %v575_v54 = vld [vmem:[%s2829_s2 + $0x20] sm:$0xff]  ;;  %v576_v3 = vld [vmem:[%s2829_s2 + $0x28] sm:$0xff] }
 0x27b   :  { %v1835_v10 = vunpack.i.h.bf16 %v1833_v26  ;;  %v1834_v43 = vunpack.i.l.bf16 %v1833_v26  ;;  %v577_v26 = vld [vmem:[%s2829_s2 + $0x30] sm:$0xff] }
 0x27c   :  { %1736 = vmatprep.subr.bf16.mxu0 %v1735_v22 }
 0x27d   :  { %1738 = vmatpush3.bf16.msra.mxu0 %v1735_v22  ;;  %v720_v4 = vsel %vm707_vm3, %v1794_v20, %v1834_v43  ;;  %v721_v57 = vsel %vm707_vm3, %v1795_v44, %v1835_v10  ;;  %v578_v22 = vld [vmem:[%s2829_s2 + $0x38] sm:$0xff]  ;;  %s1896_s2 = smov 126  }
 0x27e   :  { %v1751_v53 = vpack.c.bf16 %v721_v57, %v720_v4 }
 0x280   :  { %1752 = vmatprep.subr.bf16.mxu1 %v1751_v53 }
 0x281   :  { %1754 = vmatpush3.bf16.msra.mxu1 %v1751_v53 }
 0x28a   :  { %v1838_v56 = vpop.permute.xlu0 %1837 }
 0x28b   :  { %v1840_v36 = vunpack.i.h.bf16 %v1838_v56  ;;  %v1839_v62 = vunpack.i.l.bf16 %v1838_v56 }
 0x28d   :  { %v714_v21 = vsel %vm707_vm3, %v1799_v55, %v1839_v62  ;;  %v715_v2 = vsel %vm707_vm3, %v1800_v34, %v1840_v36 }
 0x28e   :  { %v1843_v46 = vpop.permute.xlu1 %1842  ;;  %v1739_v9 = vpack.c.bf16 %v715_v2, %v714_v21 }
 0x28f   :  { %v1845_v19 = vunpack.i.h.bf16 %v1843_v46  ;;  %v1844_v6 = vunpack.i.l.bf16 %v1843_v46 }
 0x290   :  { %1740 = vmatprep.subr.bf16.mxu0 %v1739_v9 }
 0x291   :  { %1742 = vmatpush3.bf16.msra.mxu0 %v1739_v9  ;;  %v722_v5 = vsel %vm707_vm3, %v1804_v33, %v1844_v6  ;;  %v723_v30 = vsel %vm707_vm3, %v1805_v42, %v1845_v19 }
 0x292   :  { %v1755_v18 = vpack.c.bf16 %v723_v30, %v722_v5 }
 0x294   :  { %1688 = vmatmul.mubr.msk.f32.vlgmr.msra.gmra.mrb[16].mxu0 %vm724_vm2, %v572_v38  ;;  %1756 = vmatprep.subr.bf16.mxu1 %v1755_v18 }
 0x295   :  { %1758 = vmatpush3.bf16.msra.mxu1 %v1755_v18  ;;  %1690 = vmatprep.mubr.msk.f32.mxu0 %vm724_vm2, %v573_v32 }
 0x298   :  { %1716 = vmatmul.mubr.msk.f32.vlgmr.msra.gmra.mrb[16].mxu1 %vm724_vm2, %v572_v38  ;;  %1691 = vmatmul.mubr.msk.f32.gmra.mrb[18].mxu0 %vm724_vm2, %v574_v17 }
 0x299   :  { %1718 = vmatprep.mubr.msk.f32.mxu1 %vm724_vm2, %v573_v32  ;;  %1693 = vmatprep.mubr.msk.f32.mxu0 %vm724_vm2, %v575_v54 }
 0x29c   :  { %1719 = vmatmul.mubr.msk.f32.gmra.mrb[18].mxu1 %vm724_vm2, %v574_v17  ;;  %1694 = vmatmul.mubr.msk.f32.gmra.mrb[20].mxu0 %vm724_vm2, %v576_v3 }
 0x29d   :  { %1721 = vmatprep.mubr.msk.f32.mxu1 %vm724_vm2, %v575_v54  ;;  %1696 = vmatprep.mubr.msk.f32.mxu0 %vm724_vm2, %v577_v26 }
 0x2a0   :  { %1722 = vmatmul.mubr.msk.f32.gmra.mrb[20].mxu1 %vm724_vm2, %v576_v3  ;;  %1697 = vmatmul.mubr.msk.f32.gmra.mrb[22].mxu0 %vm724_vm2, %v578_v22 }
 0x2a1   :  { %1724 = vmatprep.mubr.msk.f32.mxu1 %vm724_vm2, %v577_v26 }
 0x2a4   :  { %1725 = vmatmul.mubr.msk.f32.gmra.mrb[22].mxu1 %vm724_vm2, %v578_v22 }
 0x367   :  { %v1689_v44 = vpop.f32.mrb[16].mxu0 }
 0x368   :  { %v2376_v20 = vmul.f32 0.00048828125, %v1689_v44  ;;  %v815_v10 = vpop.f32.mrb[17].mxu0 }
 0x369   :  { %v2378_v43 = vmul.f32 0.00048828125, %v815_v10 }
 0x36a   :  { %v976_v4 = vmul.f32 %v2376_v20, %v2376_v20 }
 0x36b   :  { %v1717_v57 = vpop.f32.mrb[16].mxu1  ;;  %v975_v53 = vmul.f32 %v2378_v43, %v2378_v43  ;;  %v1692_v56 = vpop.f32.mrb[18].mxu0 }
 0x36c   :  { %v2384_v34 = vmul.f32 0.00048828125, %v1717_v57  ;;  %1009 = vrot.lane.b32.xlu1 %v976_v4, %s1894_s23  ;;  %v920_v55 = vpop.f32.mrb[17].mxu1  ;;  %v2387_v36 = vmul.f32 0.00048828125, %v1692_v56  ;;  %v825_v62 = vpop.f32.mrb[19].mxu0 }
 0x36d   :  { %v2389_v21 = vmul.f32 0.00048828125, %v920_v55  ;;  %1007 = vrot.lane.b32.xlu0 %v975_v53, %s1894_s23  ;;  %v2392_v2 = vmul.f32 0.00048828125, %v825_v62 }
 0x36e   :  { %v984_v46 = vmul.f32 %v2384_v34, %v2384_v34  ;;  %v978_v6 = vmul.f32 %v2387_v36, %v2387_v36 }
 0x36f   :  { %v983_v9 = vmul.f32 %v2389_v21, %v2389_v21  ;;  %v1720_v42 = vpop.f32.mrb[18].mxu1  ;;  %v1695_v33 = vpop.f32.mrb[20].mxu0  ;;  %v977_v18 = vmul.f32 %v2392_v2, %v2392_v2 }
 0x370   :  { %1025 = vrot.lane.b32.xlu1 %v984_v46, %s1894_s23  ;;  %v2399_v19 = vmul.f32 0.00048828125, %v1720_v42  ;;  %v930_v38 = vpop.f32.mrb[19].mxu1  ;;  %v835_v5 = vpop.f32.mrb[21].mxu0  ;;  %v2409_v54 = vmul.f32 0.00048828125, %v1695_v33 }
 0x371   :  { %1023 = vrot.lane.b32.xlu0 %v983_v9, %s1894_s23  ;;  %v2404_v30 = vmul.f32 0.00048828125, %v930_v38  ;;  %v2414_v44 = vmul.f32 0.00048828125, %v835_v5 }
 0x372   :  { %v986_v3 = vmul.f32 %v2399_v19, %v2399_v19  ;;  %v980_v53 = vmul.f32 %v2409_v54, %v2409_v54 }
 0x373   :  { %v1723_v32 = vpop.f32.mrb[20].mxu1  ;;  %v1698_v17 = vpop.f32.mrb[22].mxu0  ;;  %v985_v10 = vmul.f32 %v2404_v30, %v2404_v30  ;;  %v979_v62 = vmul.f32 %v2414_v44, %v2414_v44 }
 0x374   :  { %1013 = vrot.lane.b32.xlu1 %v978_v6, %s1894_s23  ;;  %v940_v26 = vpop.f32.mrb[21].mxu1  ;;  %v845_v22 = vpop.f32.mrb[23].mxu0  ;;  %v2419_v57 = vmul.f32 0.00048828125, %v1723_v32  ;;  %v2429_v46 = vmul.f32 0.00048828125, %v1698_v17 }
 0x375   :  { %1011 = vrot.lane.b32.xlu0 %v977_v18, %s1894_s23  ;;  %v2424_v55 = vmul.f32 0.00048828125, %v940_v26  ;;  %v2434_v42 = vmul.f32 0.00048828125, %v845_v22 }
 0x376   :  { %v988_v9 = vmul.f32 %v2419_v57, %v2419_v57  ;;  %v982_v38 = vmul.f32 %v2429_v46, %v2429_v46 }
 0x377   :  { %v1726_v4 = vpop.f32.mrb[22].mxu1  ;;  %v987_v33 = vmul.f32 %v2424_v55, %v2424_v55  ;;  %v981_v18 = vmul.f32 %v2434_v42, %v2434_v42 }
 0x378   :  { %1029 = vrot.lane.b32.xlu1 %v986_v3, %s1894_s23  ;;  %v950_v56 = vpop.f32.mrb[23].mxu1  ;;  %v2439_v6 = vmul.f32 0.00048828125, %v1726_v4 }
 0x379   :  { %1027 = vrot.lane.b32.xlu0 %v985_v10, %s1894_s23  ;;  %v2444_v5 = vmul.f32 0.00048828125, %v950_v56 }
 0x37a   :  { %v990_v32 = vmul.f32 %v2439_v6, %v2439_v6 }
 0x37b   :  { %v989_v17 = vmul.f32 %v2444_v5, %v2444_v5 }
 0x37c   :  { %1017 = vrot.lane.b32.xlu1 %v980_v53, %s1894_s23 }
 0x37d   :  { %1015 = vrot.lane.b32.xlu0 %v979_v62, %s1894_s23 }
 0x380   :  { %1033 = vrot.lane.b32.xlu1 %v988_v9, %s1894_s23 }
 0x381   :  { %1031 = vrot.lane.b32.xlu0 %v987_v33, %s1894_s23 }
 0x384   :  { %1021 = vrot.lane.b32.xlu1 %v982_v38, %s1894_s23 }
 0x385   :  { %1019 = vrot.lane.b32.xlu0 %v981_v18, %s1894_s23 }
 0x388   :  { %1037 = vrot.lane.b32.xlu1 %v990_v32, %s1894_s23 }
 0x389   :  { %1035 = vrot.lane.b32.xlu0 %v989_v17, %s1894_s23 }
 0x3de   :  { %v1010_v3 = vpop.permute.xlu1 %1009 }
 0x3df   :  { %v1056_v26 = vsub.f32 %v2376_v20, %v1010_v3  ;;  %v1008_v22 = vpop.permute.xlu0 %1007 }
 0x3e0   :  { %v1055_v10 = vsub.f32 %v2378_v43, %v1008_v22 }
 0x3e1   :  { %v1072_v4 = vadd.f32 1e-05, %v1056_v26 }
 0x3e2   :  { %v1071_v53 = vadd.f32 1e-05, %v1055_v10  ;;  %v1026_v56 = vpop.permute.xlu1 %1025 }
 0x3e3   :  { %1852 = vrsqrt.f32 %v1072_v4  ;;  %v1064_v62 = vsub.f32 %v2384_v34, %v1026_v56  ;;  %v1024_v9 = vpop.permute.xlu0 %1023 }
 0x3e4   :  { %1854 = vrsqrt.f32 %v1071_v53  ;;  %v1063_v33 = vsub.f32 %v2389_v21, %v1024_v9 }
 0x3e5   :  { %v1080_v38 = vadd.f32 1e-05, %v1064_v62 }
 0x3e6   :  { %v1079_v18 = vadd.f32 1e-05, %v1063_v33  ;;  %v1014_v32 = vpop.permute.xlu1 %1013 }
 0x3e7   :  { %1856 = vrsqrt.f32 %v1080_v38  ;;  %v1058_v17 = vsub.f32 %v2387_v36, %v1014_v32  ;;  %v1012_v3 = vpop.permute.xlu0 %1011 }
 0x3e8   :  { %1858 = vrsqrt.f32 %v1079_v18  ;;  %v1057_v22 = vsub.f32 %v2392_v2, %v1012_v3 }
 0x3e9   :  { %v1074_v26 = vadd.f32 1e-05, %v1058_v17 }
 0x3ea   :  { %v1073_v10 = vadd.f32 1e-05, %v1057_v22  ;;  %v1030_v12 = vpop.permute.xlu1 %1029 }
 0x3eb   :  { %1860 = vrsqrt.f32 %v1074_v26  ;;  %v1066_v4 = vsub.f32 %v2399_v19, %v1030_v12  ;;  %v1028_v56 = vpop.permute.xlu0 %1027 }
 0x3ec   :  { %1862 = vrsqrt.f32 %v1073_v10  ;;  %v1065_v53 = vsub.f32 %v2404_v30, %v1028_v56 }
 0x3ed   :  { %v1853_v62 = vpop.eup %1852  ;;  %v1082_v9 = vadd.f32 1e-05, %v1066_v4 }
 0x3ee   :  { %v1855_v33 = vpop.eup %1854  ;;  %v1081_v38 = vadd.f32 1e-05, %v1065_v53  ;;  %v1018_v8 = vpop.permute.xlu1 %1017  ;;  %1121 = vrot.lane.b32.xlu1 %v1853_v62, %s1894_s23 }
 0x3ef   :  { %1864 = vrsqrt.f32 %v1082_v9  ;;  %v1060_v18 = vsub.f32 %v2409_v54, %v1018_v8  ;;  %v1016_v32 = vpop.permute.xlu0 %1015  ;;  %1119 = vrot.lane.b32.xlu0 %v1855_v33, %s1894_s23 }
 0x3f0   :  { %1866 = vrsqrt.f32 %v1081_v38  ;;  %v1059_v12 = vsub.f32 %v2414_v44, %v1016_v32 }
 0x3f1   :  { %v1857_v17 = vpop.eup %1856  ;;  %v1076_v3 = vadd.f32 1e-05, %v1060_v18 }
 0x3f2   :  { %v1859_v22 = vpop.eup %1858  ;;  %v1075_v26 = vadd.f32 1e-05, %v1059_v12  ;;  %v1034_v10 = vpop.permute.xlu1 %1033  ;;  %1137 = vrot.lane.b32.xlu1 %v1857_v17, %s1894_s23 }
 0x3f3   :  { %1868 = vrsqrt.f32 %v1076_v3  ;;  %v1068_v4 = vsub.f32 %v2419_v57, %v1034_v10  ;;  %v1032_v56 = vpop.permute.xlu0 %1031  ;;  %1135 = vrot.lane.b32.xlu0 %v1859_v22, %s1894_s23 }
 0x3f4   :  { %1870 = vrsqrt.f32 %v1075_v26  ;;  %v1067_v8 = vsub.f32 %v2424_v55, %v1032_v56 }
 0x3f5   :  { %v1861_v53 = vpop.eup %1860  ;;  %v1084_v62 = vadd.f32 1e-05, %v1068_v4 }
 0x3f6   :  { %v1863_v9 = vpop.eup %1862  ;;  %v1083_v33 = vadd.f32 1e-05, %v1067_v8  ;;  %v1022_v38 = vpop.permute.xlu1 %1021  ;;  %1125 = vrot.lane.b32.xlu1 %v1861_v53, %s1894_s23 }
 0x3f7   :  { %1872 = vrsqrt.f32 %v1084_v62  ;;  %v1062_v18 = vsub.f32 %v2429_v46, %v1022_v38  ;;  %v1020_v32 = vpop.permute.xlu0 %1019  ;;  %1123 = vrot.lane.b32.xlu0 %v1863_v9, %s1894_s23 }
 0x3f8   :  { %1874 = vrsqrt.f32 %v1083_v33  ;;  %v1061_v12 = vsub.f32 %v2434_v42, %v1020_v32 }
 0x3f9   :  { %v1865_v17 = vpop.eup %1864  ;;  %v1078_v3 = vadd.f32 1e-05, %v1062_v18  ;;  %v1895_v18 = vmov 2  }
 0x3fa   :  { %v1867_v22 = vpop.eup %1866  ;;  %v1077_v26 = vadd.f32 1e-05, %v1061_v12  ;;  %1141 = vrot.lane.b32.xlu1 %v1865_v17, %s1894_s23  ;;  %v1038_v10 = vpop.permute.xlu1 %1037  ;;  %1846 = vset.pattern.permute.xlu0 %v1895_v18 }
 0x3fb   :  { %1876 = vrsqrt.f32 %v1078_v3  ;;  %v1070_v4 = vsub.f32 %v2439_v6, %v1038_v10  ;;  %1139 = vrot.lane.b32.xlu0 %v1867_v22, %s1894_s23  ;;  %v1036_v56 = vpop.permute.xlu0 %1035  ;;  %1847 = vset.pattern.permute.xlu1 %v1895_v18 }
 0x3fc   :  { %1878 = vrsqrt.f32 %v1077_v26  ;;  %v1069_v8 = vsub.f32 %v2444_v5, %v1036_v56 }
 0x3fd   :  { %v1869_v53 = vpop.eup %1868  ;;  %v1086_v62 = vadd.f32 1e-05, %v1070_v4 }
 0x3fe   :  { %v1871_v9 = vpop.eup %1870  ;;  %v1085_v33 = vadd.f32 1e-05, %v1069_v8  ;;  %1129 = vrot.lane.b32.xlu1 %v1869_v53, %s1894_s23 }
 0x3ff   :  { %1880 = vrsqrt.f32 %v1086_v62  ;;  %1127 = vrot.lane.b32.xlu0 %v1871_v9, %s1894_s23 }
 0x400   :  { %1882 = vrsqrt.f32 %v1085_v33 }
 0x401   :  { %v1873_v38 = vpop.eup %1872 }
 0x402   :  { %v1875_v32 = vpop.eup %1874  ;;  %1145 = vrot.lane.b32.xlu1 %v1873_v38, %s1894_s23 }
 0x403   :  { %1143 = vrot.lane.b32.xlu0 %v1875_v32, %s1894_s23 }
 0x405   :  { %v1877_v12 = vpop.eup %1876 }
 0x406   :  { %v1879_v17 = vpop.eup %1878  ;;  %1133 = vrot.lane.b32.xlu1 %v1877_v12, %s1894_s23 }
 0x407   :  { %1131 = vrot.lane.b32.xlu0 %v1879_v17, %s1894_s23 }
 0x409   :  { %v1881_v3 = vpop.eup %1880 }
 0x40a   :  { %v1883_v22 = vpop.eup %1882  ;;  %1149 = vrot.lane.b32.xlu1 %v1881_v3, %s1894_s23 }
 0x40b   :  { %1147 = vrot.lane.b32.xlu0 %v1883_v22, %s1894_s23 }
 0x460   :  { %v1122_v26 = vpop.permute.xlu1 %1121 }
 0x461   :  { %v1168_v10 = vmul.f32 %v1122_v26, %v2164_v29  ;;  %v1120_v4 = vpop.permute.xlu0 %1119 }
 0x462   :  { %v1167_v56 = vmul.f32 %v1120_v4, %v2145_v49 }
 0x463   :  { %1217 = vrot.lane.b32.xlu1 %v1168_v10, %s1896_s2 }
 0x464   :  { %v1138_v8 = vpop.permute.xlu1 %1137  ;;  %1215 = vrot.lane.b32.xlu0 %v1167_v56, %s1896_s2 }
 0x465   :  { %v2493_v53 = vmul.f32 %v1138_v8, %v2164_v29  ;;  %v1136_v62 = vpop.permute.xlu0 %1135 }
 0x466   :  { %v2496_v9 = vmul.f32 %v1136_v62, %v2145_v49 }
 0x467   :  { %1233 = vrot.lane.b32.xlu1 %v2493_v53, %s1896_s2 }
 0x468   :  { %v1126_v33 = vpop.permute.xlu1 %1125  ;;  %1231 = vrot.lane.b32.xlu0 %v2496_v9, %s1896_s2 }
 0x469   :  { %v2503_v38 = vmul.f32 %v1126_v33, %v2186_v58  ;;  %v1124_v18 = vpop.permute.xlu0 %1123 }
 0x46a   :  { %v1169_v32 = vmul.f32 %v1124_v18, %v2172_v41 }
 0x46b   :  { %1221 = vrot.lane.b32.xlu1 %v2503_v38, %s1896_s2 }
 0x46c   :  { %v1142_v12 = vpop.permute.xlu1 %1141  ;;  %1219 = vrot.lane.b32.xlu0 %v1169_v32, %s1896_s2 }
 0x46d   :  { %v2510_v49 = vmul.f32 %v1142_v12, %v2186_v58  ;;  %v1140_v17 = vpop.permute.xlu0 %1139 }
 0x46e   :  { %v2513_v3 = vmul.f32 %v1140_v17, %v2172_v41 }
 0x46f   :  { %1237 = vrot.lane.b32.xlu1 %v2510_v49, %s1896_s2 }
 0x470   :  { %v1130_v22 = vpop.permute.xlu1 %1129  ;;  %1235 = vrot.lane.b32.xlu0 %v2513_v3, %s1896_s2 }
 0x471   :  { %v2520_v26 = vmul.f32 %v1130_v22, %v2205_v45  ;;  %v1128_v4 = vpop.permute.xlu0 %1127 }
 0x472   :  { %v2523_v8 = vmul.f32 %v1128_v4, %v2196_v50 }
 0x473   :  { %1225 = vrot.lane.b32.xlu1 %v2520_v26, %s1896_s2 }
 0x474   :  { %v1146_v62 = vpop.permute.xlu1 %1145  ;;  %1223 = vrot.lane.b32.xlu0 %v2523_v8, %s1896_s2 }
 0x475   :  { %v2530_v33 = vmul.f32 %v1146_v62, %v2205_v45  ;;  %v1144_v18 = vpop.permute.xlu0 %1143 }
 0x476   :  { %v2533_v12 = vmul.f32 %v1144_v18, %v2196_v50 }
 0x477   :  { %1241 = vrot.lane.b32.xlu1 %v2530_v33, %s1896_s2 }
 0x478   :  { %v1134_v17 = vpop.permute.xlu1 %1133  ;;  %1239 = vrot.lane.b32.xlu0 %v2533_v12, %s1896_s2 }
 0x479   :  { %v2540_v22 = vmul.f32 %v1134_v17, %v2241_v61  ;;  %v1132_v4 = vpop.permute.xlu0 %1131  ;;  %v1184_v17 = vsub.f32 %v2164_v29, %v2376_v20 }
 0x47a   :  { %v2543_v31 = vmul.f32 %v1132_v4, %v2214_v1 }
 0x47b   :  { %1229 = vrot.lane.b32.xlu1 %v2540_v22, %s1896_s2 }
 0x47c   :  { %v1150_v62 = vpop.permute.xlu1 %1149  ;;  %1227 = vrot.lane.b32.xlu0 %v2543_v31, %s1896_s2 }
 0x47d   :  { %v2550_v18 = vmul.f32 %v1150_v62, %v2241_v61  ;;  %v1148_v25 = vpop.permute.xlu0 %1147  ;;  %v2564_v62 = vld [vmem:[%s2828_s3] sm:$0xff] }
 0x47e   :  { %v2553_v11 = vmul.f32 %v1148_v25, %v2214_v1  ;;  %v1183_v25 = vsub.f32 %v2564_v62, %v2378_v43  ;;  %v1191_v20 = vsub.f32 %v2564_v62, %v2389_v21  ;;  %v1194_v21 = vsub.f32 %v2186_v58, %v2399_v19 }
 0x47f   :  { %1245 = vrot.lane.b32.xlu1 %v2550_v18, %s1896_s2  ;;  %v1187_v19 = vsub.f32 %v2196_v50, %v2414_v44 }
 0x480   :  { %1243 = vrot.lane.b32.xlu0 %v2553_v11, %s1896_s2 }
 0x483   :  { %1364 = vperm.xlu1 %1847, %v1168_v10   ;;  %v1192_v10 = vsub.f32 %v2164_v29, %v2384_v34 }
 0x484   :  { %1360 = vperm.xlu0 %1846, %v1167_v56  }
 0x487   :  { %1368 = vperm.xlu1 %1847, %v1169_v32  }
 0x4d5   :  { %v1218_v4 = vpop.permute.xlu1 %1217 }
 0x4d6   :  { %v1264_v7 = vmul.f32 %v1218_v4, %v1184_v17  ;;  %v1216_v0 = vpop.permute.xlu0 %1215  ;;  %v1188_v4 = vsub.f32 %v2205_v45, %v2409_v54  ;;  %v2604_v54 = vld [vmem:[%s2828_s3 + $0x20] sm:$0xff] }
 0x4d7   :  { %v1263_v60 = vmul.f32 %v1216_v0, %v1183_v25  ;;  %v1186_v0 = vsub.f32 %v2186_v58, %v2387_v36  ;;  %v2587_v36 = vld [vmem:[%s2828_s3 + $0x10] sm:$0xff] }
 0x4d8   :  { %1297 = vrot.lane.b32.xlu1 %v1264_v7, %s1897_s15  ;;  %v1185_v7 = vsub.f32 %v2172_v41, %v2392_v2 }
 0x4d9   :  { %v1234_v56 = vpop.permute.xlu1 %1233  ;;  %1295 = vrot.lane.b32.xlu0 %v1263_v60, %s1897_s15 }
 0x4da   :  { %v1272_v32 = vmul.f32 %v1234_v56, %v1192_v10  ;;  %v1232_v39 = vpop.permute.xlu0 %1231 }
 0x4db   :  { %v1271_v35 = vmul.f32 %v1232_v39, %v1191_v20 }
 0x4dc   :  { %1313 = vrot.lane.b32.xlu1 %v1272_v32, %s1897_s15  ;;  %v1195_v32 = vsub.f32 %v2604_v54, %v2424_v55  ;;  %v1198_v55 = vsub.f32 %v2241_v61, %v2439_v6 }
 0x4dd   :  { %v1222_v43 = vpop.permute.xlu1 %1221  ;;  %1311 = vrot.lane.b32.xlu0 %v1271_v35, %s1897_s15  ;;  %v1193_v35 = vsub.f32 %v2587_v36, %v2404_v30  ;;  %v1196_v30 = vsub.f32 %v2205_v45, %v2419_v57  ;;  %v1189_v57 = vsub.f32 %v2214_v1, %v2434_v42 }
 0x4de   :  { %v1266_v29 = vmul.f32 %v1222_v43, %v1186_v0  ;;  %v1220_v34 = vpop.permute.xlu0 %1219  ;;  %v1190_v43 = vsub.f32 %v2241_v61, %v2429_v46  ;;  %v2621_v46 = vld [vmem:[%s2828_s3 + $0x30] sm:$0xff] }
 0x4df   :  { %v1265_v60 = vmul.f32 %v1220_v34, %v1185_v7 }
 0x4e0   :  { %1301 = vrot.lane.b32.xlu1 %v1266_v29, %s1897_s15 }
 0x4e1   :  { %v1238_v39 = vpop.permute.xlu1 %1237  ;;  %1299 = vrot.lane.b32.xlu0 %v1265_v60, %s1897_s15 }
 0x4e2   :  { %v1274_v41 = vmul.f32 %v1238_v39, %v1194_v21  ;;  %v1236_v2 = vpop.permute.xlu0 %1235  ;;  %v1197_v21 = vsub.f32 %v2621_v46, %v2444_v5 }
 0x4e3   :  { %v1273_v17 = vmul.f32 %v1236_v2, %v1193_v35  ;;  %v1889_v35 = vld [vmem:[%s2828_s3 + $0x18] sm:$0xff] }
 0x4e4   :  { %1317 = vrot.lane.b32.xlu1 %v1274_v41, %s1897_s15 }
 0x4e5   :  { %v1226_v58 = vpop.permute.xlu1 %1225  ;;  %1315 = vrot.lane.b32.xlu0 %v1273_v17, %s1897_s15 }
 0x4e6   :  { %v1268_v25 = vmul.f32 %v1226_v58, %v1188_v4  ;;  %v1224_v10 = vpop.permute.xlu0 %1223 }
 0x4e7   :  { %v1267_v56 = vmul.f32 %v1224_v10, %v1187_v19 }
 0x4e8   :  { %1305 = vrot.lane.b32.xlu1 %v1268_v25, %s1897_s15 }
 0x4e9   :  { %v1242_v20 = vpop.permute.xlu1 %1241  ;;  %1303 = vrot.lane.b32.xlu0 %v1267_v56, %s1897_s15 }
 0x4ea   :  { %v1276_v50 = vmul.f32 %v1242_v20, %v1196_v30  ;;  %v1240_v44 = vpop.permute.xlu0 %1239  ;;  %v1890_v20 = vld [vmem:[%s2828_s3 + $0x28] sm:$0xff] }
 0x4eb   :  { %v1275_v0 = vmul.f32 %v1240_v44, %v1195_v32 }
 0x4ec   :  { %1321 = vrot.lane.b32.xlu1 %v1276_v50, %s1897_s15 }
 0x4ed   :  { %v1230_v45 = vpop.permute.xlu1 %1229  ;;  %1319 = vrot.lane.b32.xlu0 %v1275_v0, %s1897_s15 }
 0x4ee   :  { %v1270_v7 = vmul.f32 %v1230_v45, %v1190_v43  ;;  %v1228_v29 = vpop.permute.xlu0 %1227 }
 0x4ef   :  { %v1269_v34 = vmul.f32 %v1228_v29, %v1189_v57 }
 0x4f0   :  { %1309 = vrot.lane.b32.xlu1 %v1270_v7, %s1897_s15 }
 0x4f1   :  { %v1246_v60 = vpop.permute.xlu1 %1245  ;;  %1307 = vrot.lane.b32.xlu0 %v1269_v34, %s1897_s15 }
 0x4f2   :  { %v1278_v1 = vmul.f32 %v1246_v60, %v1198_v55  ;;  %v1244_v42 = vpop.permute.xlu0 %1243 }
 0x4f3   :  { %v1277_v39 = vmul.f32 %v1244_v42, %v1197_v21 }
 0x4f4   :  { %1325 = vrot.lane.b32.xlu1 %v1278_v1, %s1897_s15 }
 0x4f5   :  { %1323 = vrot.lane.b32.xlu0 %v1277_v39, %s1897_s15 }
 0x4f8   :  { %1376 = vperm.xlu1 %1847, %v2523_v8  }
 0x4f9   :  { %1372 = vperm.xlu0 %1846, %v2503_v38  }
 0x4fc   :  { %1384 = vperm.xlu1 %1847, %v2543_v31   ;;  %v1898_v31 = vmov 3  }
 0x4fd   :  { %1380 = vperm.xlu0 %1846, %v2520_v26  }
 0x500   :  { %1392 = vperm.xlu1 %1847, %v2496_v9  }
 0x501   :  { %1388 = vperm.xlu0 %1846, %v2540_v22  }
 0x502   :  { %v1365_v61 = vpop.permute.xlu1 %1364 }
 0x503   :  { %v2634_v6 = vmul.f32 %v1365_v61, %v1992_v24  ;;  %v2637_v5 = vmul.f32 %v1365_v61, %v1996_v28  ;;  %v2648_v28 = vpop.permute.xlu0 %1360 }
 0x504   :  { %1400 = vperm.xlu1 %1847, %v2513_v3  }
 0x505   :  { %1396 = vperm.xlu0 %1846, %v2493_v53   ;;  %v1888_v53 = vld [vmem:[%s2828_s3 + $0x8] sm:$0xff] }
 0x506   :  { %v2646_v24 = vpop.permute.xlu1 %1368 }
 0x508   :  { %1408 = vperm.xlu1 %1847, %v2533_v12  }
 0x509   :  { %1404 = vperm.xlu0 %1846, %v2510_v49  }
 0x50c   :  { %1416 = vperm.xlu1 %1847, %v2553_v11  }
 0x50d   :  { %1412 = vperm.xlu0 %1846, %v2530_v33  }
 0x510   :  { %1849 = vset.pattern.permute.xlu1 %v1898_v31 }
 0x511   :  { %1420 = vperm.xlu0 %1846, %v2550_v18  }
 0x515   :  { %1848 = vset.pattern.permute.xlu0 %v1898_v31 }
 0x54a   :  { %v1298_v9 = vpop.permute.xlu1 %1297 }
 0x54b   :  { %v1344_v38 = vadd.f32 %v1888_v53, %v1298_v9  ;;  %v1296_v49 = vpop.permute.xlu0 %1295 }
 0x54c   :  { %v1343_v12 = vadd.f32 %v2564_v62, %v1296_v49 }
 0x54d   :  { %1462 = vperm.xlu0 %1848, %v1344_v38  }
 0x54e   :  { %v1314_v11 = vpop.permute.xlu1 %1313 }
 0x54f   :  { %v1352_v3 = vadd.f32 %v1888_v53, %v1314_v11  ;;  %v1312_v26 = vpop.permute.xlu0 %1311 }
 0x550   :  { %v1351_v8 = vadd.f32 %v2564_v62, %v1312_v26 }
 0x551   :  { %1502 = vperm.xlu1 %1849, %v1352_v3  }
 0x552   :  { %v1302_v33 = vpop.permute.xlu1 %1301  ;;  %1497 = vperm.xlu0 %1848, %v1351_v8  }
 0x553   :  { %v1300_v22 = vpop.permute.xlu0 %1299  ;;  %v1346_v41 = vadd.f32 %v1889_v35, %v1302_v33 }
 0x554   :  { %v1345_v62 = vadd.f32 %v2587_v36, %v1300_v22 }
 0x555   :  { %1457 = vperm.xlu1 %1849, %v1343_v12  }
 0x556   :  { %v1318_v18 = vpop.permute.xlu1 %1317 }
 0x557   :  { %v1316_v2 = vpop.permute.xlu0 %1315  ;;  %v1354_v58 = vadd.f32 %v1889_v35, %v1318_v18 }
 0x558   :  { %v1353_v17 = vadd.f32 %v2587_v36, %v1316_v2 }
 0x559   :  { %1472 = vperm.xlu1 %1849, %v1346_v41   ;;  %v1424_v41 = vmul.f32 %v2648_v28, %v1974_v15 }
 0x55a   :  { %v1306_v4 = vpop.permute.xlu1 %1305  ;;  %1507 = vperm.xlu0 %1848, %v1353_v17  }
 0x55b   :  { %v1304_v19 = vpop.permute.xlu0 %1303  ;;  %v1348_v32 = vadd.f32 %v1890_v20, %v1306_v4 }
 0x55c   :  { %v1347_v25 = vadd.f32 %v2604_v54, %v1304_v19 }
 0x55d   :  { %1512 = vperm.xlu1 %1849, %v1354_v58  }
 0x55e   :  { %1477 = vperm.xlu0 %1848, %v1347_v25   ;;  %v1322_v56 = vpop.permute.xlu1 %1321 }
 0x55f   :  { %v1320_v10 = vpop.permute.xlu0 %1319  ;;  %v1356_v43 = vadd.f32 %v1890_v20, %v1322_v56 }
 0x560   :  { %v1355_v30 = vadd.f32 %v2604_v54, %v1320_v10  ;;  %v1891_v54 = vld [vmem:[%s2828_s3 + $0x38] sm:$0xff] }
 0x561   :  { %1467 = vperm.xlu1 %1849, %v1345_v62  }
 0x562   :  { %1517 = vperm.xlu0 %1848, %v1355_v30   ;;  %v1310_v0 = vpop.permute.xlu1 %1309 }
 0x563   :  { %v1308_v50 = vpop.permute.xlu0 %1307  ;;  %v1350_v57 = vadd.f32 %v1891_v54, %v1310_v0  ;;  %v2865_v0 = vld [vmem:[#allocation4_spill] sm:$0xff] }
 0x564   :  { %v1349_v44 = vadd.f32 %v2621_v46, %v1308_v50  ;;  %v2863_v50 = vld [vmem:[#allocation2_spill] sm:$0xff] }
 0x565   :  { %1482 = vperm.xlu1 %1849, %v1348_v32  }
 0x566   :  { %1487 = vperm.xlu0 %1848, %v1349_v44   ;;  %v1326_v7 = vpop.permute.xlu1 %1325  ;;  %v1427_v44 = vmul.f32 %v2646_v24, %v2863_v50 }
 0x567   :  { %v1324_v45 = vpop.permute.xlu0 %1323  ;;  %v1358_v29 = vadd.f32 %v1891_v54, %v1326_v7 }
 0x568   :  { %v1357_v36 = vadd.f32 %v2621_v46, %v1324_v45  ;;  %v2866_v45 = vld [vmem:[#allocation5_spill] sm:$0xff] }
 0x569   :  { %1522 = vperm.xlu1 %1849, %v1356_v43  }
 0x56a   :  { %1527 = vperm.xlu0 %1848, %v1357_v36  }
 0x56d   :  { %1492 = vperm.xlu1 %1849, %v1350_v57  }
 0x571   :  { %1532 = vperm.xlu1 %1849, %v1358_v29  }
 0x577   :  { %v1377_v60 = vpop.permute.xlu1 %1376 }
 0x578   :  { %v1373_v34 = vpop.permute.xlu0 %1372 }
 0x579   :  { %v1429_v15 = vmul.f32 %v1373_v34, %v2030_v47 }
 0x57b   :  { %v2674_v1 = vpop.permute.xlu1 %1384 }
 0x57c   :  { %v2670_v55 = vpop.permute.xlu0 %1380 }
 0x57f   :  { %v1393_v42 = vpop.permute.xlu1 %1392 }
 0x580   :  { %v2672_v21 = vpop.permute.xlu0 %1388  ;;  %v1439_v33 = vmul.f32 %v1393_v42, %v1972_v14  ;;  %v1440_v12 = vmul.f32 %v1393_v42, %v1976_v16  ;;  %v2868_v42 = vld [vmem:[#allocation8_spill] sm:$0xff] }
 0x583   :  { %v1401_v61 = vpop.permute.xlu1 %1400 }
 0x584   :  { %v1397_v46 = vpop.permute.xlu0 %1396  ;;  %v1443_v2 = vmul.f32 %v1401_v61, %v2012_v37  ;;  %v1444_v17 = vmul.f32 %v1401_v61, %v2016_v40  ;;  %v1431_v37 = vmul.f32 %v1377_v60, %v2054_v59  ;;  %v1432_v40 = vmul.f32 %v1377_v60, %v2058_v63  ;;  %v2864_v59 = vld [vmem:[#allocation3_spill] sm:$0xff]  ;;  %v2867_v60 = vld [vmem:[#allocation6_spill] sm:$0xff] }
 0x585   :  { %v1441_v26 = vmul.f32 %v1397_v46, %v1990_v23  ;;  %v1442_v8 = vmul.f32 %v1397_v46, %v1994_v27  ;;  %v1423_v27 = vmul.f32 %v2648_v28, %v1970_v13  ;;  %v1430_v28 = vmul.f32 %v1373_v34, %v2038_v51  ;;  %v2869_v61 = vld [vmem:[#allocation10_spill] sm:$0xff] }
 0x586   :  { %v1428_v63 = vmul.f32 %v2646_v24, %v2864_v59  ;;  %v1433_v46 = vmul.f32 %v2670_v55, %v2867_v60 }
 0x587   :  { %v1409_v9 = vpop.permute.xlu1 %1408 }
 0x588   :  { %v1405_v39 = vpop.permute.xlu0 %1404  ;;  %v1447_v43 = vmul.f32 %v1409_v9, %v2865_v0  ;;  %v1448_v36 = vmul.f32 %v1409_v9, %v2866_v45  ;;  %v1435_v9 = vmul.f32 %v2674_v1, %v2869_v61 }
 0x589   :  { %v1445_v51 = vmul.f32 %v1405_v39, %v2032_v48  ;;  %v1446_v10 = vmul.f32 %v1405_v39, %v2040_v52  ;;  %v1434_v39 = vmul.f32 %v2670_v55, %v2868_v42 }
 0x58b   :  { %v2680_v38 = vpop.permute.xlu1 %1416 }
 0x58c   :  { %v2676_v31 = vpop.permute.xlu0 %1412 }
 0x590   :  { %v2678_v53 = vpop.permute.xlu0 %1420 }
 0x5cc   :  { %v1463_v49 = vpop.permute.xlu0 %1462 }
 0x5cd   :  { %v1537_v11 = vadd.f32 %v1463_v49, %v2634_v6  ;;  %v1538_v3 = vadd.f32 %v1463_v49, %v2637_v5  ;;  %v2870_v49 = vld [vmem:[#allocation12_spill] sm:$0xff] }
 0x5cf   :  { %1569 = vst [vmem:[%s2830_s4 + $0x10] sm:$0xff] %v1537_v11  ;;  %1570 = vst [vmem:[%s2830_s4 + $0x18] sm:$0xff] %v1538_v3  ;;  %v1436_v11 = vmul.f32 %v2674_v1, %v2870_v49 }
 0x5d0   :  { %v1503_v22 = vpop.permute.xlu1 %1502 }
 0x5d1   :  { %v1553_v6 = vadd.f32 %v1503_v22, %v1441_v26  ;;  %v1554_v18 = vadd.f32 %v1503_v22, %v1442_v8  ;;  %v1498_v5 = vpop.permute.xlu0 %1497  ;;  %v2871_v22 = vld [vmem:[#allocation7_spill] sm:$0xff] }
 0x5d2   :  { %v1551_v35 = vadd.f32 %v1498_v5, %v1439_v33  ;;  %v1552_v23 = vadd.f32 %v1498_v5, %v1440_v12  ;;  %v2873_v5 = vld [vmem:[#allocation11_spill] sm:$0xff] }
 0x5d3   :  { %1585 = vst [vmem:[%s2830_s4 + $0x90] sm:$0xff] %v1553_v6  ;;  %1586 = vst [vmem:[%s2830_s4 + $0x98] sm:$0xff] %v1554_v18  ;;  %v1449_v6 = vmul.f32 %v2676_v31, %v2871_v22  ;;  %v2872_v18 = vld [vmem:[#allocation9_spill] sm:$0xff] }
 0x5d4   :  { %1583 = vst [vmem:[%s2830_s4 + $0x80] sm:$0xff] %v1551_v35  ;;  %1584 = vst [vmem:[%s2830_s4 + $0x88] sm:$0xff] %v1552_v23  ;;  %v1458_v13 = vpop.permute.xlu1 %1457  ;;  %v1450_v1 = vmul.f32 %v2676_v31, %v2872_v18  ;;  %v1451_v35 = vmul.f32 %v2680_v38, %v2873_v5  ;;  %v2874_v23 = vld [vmem:[#allocation13_spill] sm:$0xff] }
 0x5d5   :  { %v1535_v14 = vadd.f32 %v1458_v13, %v1423_v27  ;;  %v1536_v16 = vadd.f32 %v1458_v13, %v1424_v41  ;;  %v1452_v27 = vmul.f32 %v2680_v38, %v2874_v23 }
 0x5d7   :  { %1567 = vst [vmem:[%s2830_s4] sm:$0xff] %v1535_v14  ;;  %1568 = vst [vmem:[%s2830_s4 + $0x8] sm:$0xff] %v1536_v16 }
 0x5d8   :  { %v1473_v4 = vpop.permute.xlu1 %1472 }
 0x5d9   :  { %v1541_v58 = vadd.f32 %v1473_v4, %v1429_v15  ;;  %v1542_v19 = vadd.f32 %v1473_v4, %v1430_v28  ;;  %v1508_v25 = vpop.permute.xlu0 %1507  ;;  %v2875_v28 = vld [vmem:[#allocation14_spill] sm:$0xff] }
 0x5da   :  { %v1555_v62 = vadd.f32 %v1508_v25, %v1443_v2  ;;  %v1556_v47 = vadd.f32 %v1508_v25, %v1444_v17  ;;  %v1437_v2 = vmul.f32 %v2672_v21, %v2875_v28  ;;  %v2876_v17 = vld [vmem:[#allocation16_spill] sm:$0xff] }
 0x5db   :  { %1573 = vst [vmem:[%s2830_s4 + $0x30] sm:$0xff] %v1541_v58  ;;  %1574 = vst [vmem:[%s2830_s4 + $0x38] sm:$0xff] %v1542_v19  ;;  %v1438_v38 = vmul.f32 %v2672_v21, %v2876_v17  ;;  %v2877_v21 = vld [vmem:[#allocation15_spill] sm:$0xff] }
 0x5dc   :  { %1587 = vst [vmem:[%s2830_s4 + $0xa0] sm:$0xff] %v1555_v62  ;;  %1588 = vst [vmem:[%s2830_s4 + $0xa8] sm:$0xff] %v1556_v47  ;;  %v1513_v48 = vpop.permute.xlu1 %1512  ;;  %v1453_v25 = vmul.f32 %v2678_v53, %v2877_v21  ;;  %v2878_v62 = vld [vmem:[#allocation17_spill] sm:$0xff] }
 0x5dd   :  { %v1557_v52 = vadd.f32 %v1513_v48, %v1445_v51  ;;  %v1558_v56 = vadd.f32 %v1513_v48, %v1446_v10  ;;  %v1478_v30 = vpop.permute.xlu0 %1477  ;;  %v1454_v47 = vmul.f32 %v2678_v53, %v2878_v62 }
 0x5de   :  { %v1543_v20 = vadd.f32 %v1478_v30, %v1431_v37  ;;  %v1544_v32 = vadd.f32 %v1478_v30, %v1432_v40 }
 0x5df   :  { %1589 = vst [vmem:[%s2830_s4 + $0xb0] sm:$0xff] %v1557_v52  ;;  %1590 = vst [vmem:[%s2830_s4 + $0xb8] sm:$0xff] %v1558_v56 }
 0x5e0   :  { %1575 = vst [vmem:[%s2830_s4 + $0x40] sm:$0xff] %v1543_v20  ;;  %1576 = vst [vmem:[%s2830_s4 + $0x48] sm:$0xff] %v1544_v32  ;;  %v1468_v24 = vpop.permute.xlu1 %1467 }
 0x5e1   :  { %v1539_v54 = vadd.f32 %v1468_v24, %v1427_v44  ;;  %v1540_v57 = vadd.f32 %v1468_v24, %v1428_v63  ;;  %v1518_v7 = vpop.permute.xlu0 %1517 }
 0x5e2   :  { %v1559_v29 = vadd.f32 %v1518_v7, %v1447_v43  ;;  %v1560_v34 = vadd.f32 %v1518_v7, %v1448_v36 }
 0x5e3   :  { %1571 = vst [vmem:[%s2830_s4 + $0x20] sm:$0xff] %v1539_v54  ;;  %1572 = vst [vmem:[%s2830_s4 + $0x28] sm:$0xff] %v1540_v57 }
 0x5e4   :  { %1591 = vst [vmem:[%s2830_s4 + $0xc0] sm:$0xff] %v1559_v29  ;;  %1592 = vst [vmem:[%s2830_s4 + $0xc8] sm:$0xff] %v1560_v34  ;;  %v1483_v55 = vpop.permute.xlu1 %1482 }
 0x5e5   :  { %v1545_v3 = vadd.f32 %v1483_v55, %v1433_v46  ;;  %v1546_v26 = vadd.f32 %v1483_v55, %v1434_v39  ;;  %v1488_v8 = vpop.permute.xlu0 %1487 }
 0x5e6   :  { %v1547_v33 = vadd.f32 %v1488_v8, %v1435_v9  ;;  %v1548_v12 = vadd.f32 %v1488_v8, %v1436_v11 }
 0x5e7   :  { %1577 = vst [vmem:[%s2830_s4 + $0x50] sm:$0xff] %v1545_v3  ;;  %1578 = vst [vmem:[%s2830_s4 + $0x58] sm:$0xff] %v1546_v26 }
 0x5e8   :  { %1579 = vst [vmem:[%s2830_s4 + $0x60] sm:$0xff] %v1547_v33  ;;  %1580 = vst [vmem:[%s2830_s4 + $0x68] sm:$0xff] %v1548_v12  ;;  %v1523_v31 = vpop.permute.xlu1 %1522 }
 0x5e9   :  { %v1561_v41 = vadd.f32 %v1523_v31, %v1449_v6  ;;  %v1562_v13 = vadd.f32 %v1523_v31, %v1450_v1  ;;  %v1528_v14 = vpop.permute.xlu0 %1527 }
 0x5ea   :  { %v1563_v16 = vadd.f32 %v1528_v14, %v1451_v35  ;;  %v1564_v15 = vadd.f32 %v1528_v14, %v1452_v27 }
 0x5eb   :  { %1593 = vst [vmem:[%s2830_s4 + $0xd0] sm:$0xff] %v1561_v41  ;;  %1594 = vst [vmem:[%s2830_s4 + $0xd8] sm:$0xff] %v1562_v13 }
 0x5ec   :  { %1595 = vst [vmem:[%s2830_s4 + $0xe0] sm:$0xff] %v1563_v16  ;;  %1596 = vst [vmem:[%s2830_s4 + $0xe8] sm:$0xff] %v1564_v15  ;;  %v1493_v4 = vpop.permute.xlu1 %1492 }
 0x5ed   :  { %v1549_v58 = vadd.f32 %v1493_v4, %v1437_v2  ;;  %v1550_v19 = vadd.f32 %v1493_v4, %v1438_v38 }
 0x5ef   :  { %1581 = vst [vmem:[%s2830_s4 + $0x70] sm:$0xff] %v1549_v58  ;;  %1582 = vst [vmem:[%s2830_s4 + $0x78] sm:$0xff] %v1550_v19 }
 0x5f0   :  { %v1533_v51 = vpop.permute.xlu1 %1532 }
 0x5f1   :  { %v1565_v10 = vadd.f32 %v1533_v51, %v1453_v25  ;;  %v1566_v37 = vadd.f32 %v1533_v51, %v1454_v47 }
 0x5f3   :  { %1597 = vst [vmem:[%s2830_s4 + $0xf0] sm:$0xff] %v1565_v10  ;;  %1598 = vst [vmem:[%s2830_s4 + $0xf8] sm:$0xff] %v1566_v37 }

</bundles_post_ra>
